<compile_context>
chip_gen: v5e
topology: v5e:2x2
jax: 0.10.0
libtpu: 0.0.40
codegen_flags: <defaults>
</compile_context>

<pallas_src>
import numpy as np

import jax
import jax.numpy as jnp
from jax import lax
from jax.experimental import pallas as pl
from jax.experimental.pallas import tpu as pltpu


# --------------------------- in-kernel helpers ------------------------------ #

def _sel_rows(p, n, odd):
    """(p, n) selection matrix S with S[r, c] = 1 iff c == 2*r + odd."""
    r = lax.broadcasted_iota(jnp.int32, (p, n), 0)
    c = lax.broadcasted_iota(jnp.int32, (p, n), 1)
    return jnp.where(c == 2 * r + odd, 1.0, 0.0).astype(jnp.bfloat16)


def _sel_cols(n, p, odd):
    """(n, p) selection matrix T with T[r, c] = 1 iff r == 2*c + odd."""
    r = lax.broadcasted_iota(jnp.int32, (n, p), 0)
    c = lax.broadcasted_iota(jnp.int32, (n, p), 1)
    return jnp.where(r == 2 * c + odd, 1.0, 0.0).astype(jnp.bfloat16)


def _pool2x2(a_bf16, oh, oc):
    """2x2 max-pool of a (2*oh, 2*oc) bf16 activation whose lanes are
    channel-major (co*OW + w, OW even), done entirely with MXU selection
    matmuls + VPU max (no strided slices / reshapes).  Returns (oh, oc) f32."""
    rows, cols = a_bf16.shape
    se, so = _sel_rows(oh, rows, 0), _sel_rows(oh, rows, 1)
    ph = jnp.maximum(
        jnp.dot(se, a_bf16, preferred_element_type=jnp.float32),
        jnp.dot(so, a_bf16, preferred_element_type=jnp.float32),
    ).astype(jnp.bfloat16)
    te, to = _sel_cols(cols, oc, 0), _sel_cols(cols, oc, 1)
    return jnp.maximum(
        jnp.dot(ph, te, preferred_element_type=jnp.float32),
        jnp.dot(ph, to, preferred_element_type=jnp.float32),
    )


# ------------------------------ fused kernel -------------------------------- #

def _net_kernel(x_ref, w1_ref, b1_ref, w2_ref, b2_ref,
                f1_ref, fb1_ref, f2_ref, fb2_ref, f3_ref, fb3_ref,
                out_ref, p1_ref, p2_ref):
    """One sample per grid step: conv1+relu+pool -> conv2+relu+pool -> fc1..fc3.

    x_ref  : (1, 32, 96) f32   image rows, row layout [c*32 + w]
    w1_ref : (5, 96, 168) bf16 conv1 Toeplitz blocks, out lanes [co*28 + w]
    w2_ref : (5, 84, 160) bf16 conv2 Toeplitz blocks, out lanes [co*10 + w]
    f1_ref : (5, 80, 120) bf16 fc1 split per pooled row (flatten perm folded in)
    p1_ref : (14, 84) f32 scratch (pool1 output), p2_ref: (5, 80) f32 scratch
    """
    f32 = jnp.float32

    # ---- conv1 (3->6, k5) : 5 width-Toeplitz matmuls, f32 accumulation ----
    acc = jnp.dot(x_ref[0, 0:28, :].astype(jnp.bfloat16), w1_ref[0],
                  preferred_element_type=f32)
    for i in range(1, 5):
        acc = acc + jnp.dot(x_ref[0, i:i + 28, :].astype(jnp.bfloat16),
                            w1_ref[i], preferred_element_type=f32)
    a1 = jnp.maximum(acc + b1_ref[...], 0.0).astype(jnp.bfloat16)   # (28, 168)

    # ---- fused 2x2 max-pool (in VMEM, never hits HBM) ----
    p1_ref[...] = _pool2x2(a1, 14, 84)                              # (14, 84)

    # ---- conv2 (6->16, k5) ----
    acc2 = jnp.dot(p1_ref[0:10, :].astype(jnp.bfloat16), w2_ref[0],
                   preferred_element_type=f32)
    for i in range(1, 5):
        acc2 = acc2 + jnp.dot(p1_ref[i:i + 10, :].astype(jnp.bfloat16),
                              w2_ref[i], preferred_element_type=f32)
    a2 = jnp.maximum(acc2 + b2_ref[...], 0.0).astype(jnp.bfloat16)  # (10, 160)

    # ---- fused 2x2 max-pool ----
    p2_ref[...] = _pool2x2(a2, 5, 80)                               # (5, 80)

    # ---- fc1 (400->120): flatten permutation folded into per-row weights ----
    # TODO(synk): nn.Dropout(0.4) treated as identity (eval mode).
    y = jnp.dot(p2_ref[0:1, :].astype(jnp.bfloat16), f1_ref[0],
                preferred_element_type=f32)
    for h in range(1, 5):
        y = y + jnp.dot(p2_ref[h:h + 1, :].astype(jnp.bfloat16), f1_ref[h],
                        preferred_element_type=f32)
    y = jnp.maximum(y + fb1_ref[...], 0.0).astype(jnp.bfloat16)     # (1, 120)

    # ---- fc2 (120->84) ----
    y = jnp.dot(y, f2_ref[...], preferred_element_type=f32) + fb2_ref[...]
    y = jnp.maximum(y, 0.0).astype(jnp.bfloat16)                    # (1, 84)

    # ---- fc3 (84->10) ----
    out_ref[0] = jnp.dot(y, f3_ref[...], preferred_element_type=f32) + fb3_ref[...]


# ------------------------------ JAX wrapper --------------------------------- #

def net_forward(prepared, x_nchw):
    n = x_nchw.shape[0]
    # Image rows, channel-major within a row: X[n, h, c*32 + w].  (The only
    # XLA-side prep; 12 KB/sample.)
    x_rows = x_nchw.transpose(0, 2, 1, 3).reshape(n, 32, 96)

    out = pl.pallas_call(
        _net_kernel,
        out_shape=jax.ShapeDtypeStruct((n, 1, 10), jnp.float32),
        grid_spec=pltpu.PrefetchScalarGridSpec(
            num_scalar_prefetch=0,
            grid=(n,),                                     # 1 sample / step
            in_specs=[
                pl.BlockSpec((1, 32, 96), lambda i: (i, 0, 0)),    # x
                pl.BlockSpec((5, 96, 168), lambda i: (0, 0, 0)),   # conv1 W
                pl.BlockSpec((1, 168), lambda i: (0, 0)),          # conv1 b
                pl.BlockSpec((5, 84, 160), lambda i: (0, 0, 0)),   # conv2 W
                pl.BlockSpec((1, 160), lambda i: (0, 0)),          # conv2 b
                pl.BlockSpec((5, 80, 120), lambda i: (0, 0, 0)),   # fc1 W
                pl.BlockSpec((1, 120), lambda i: (0, 0)),          # fc1 b
                pl.BlockSpec((120, 84), lambda i: (0, 0)),         # fc2 W
                pl.BlockSpec((1, 84), lambda i: (0, 0)),           # fc2 b
                pl.BlockSpec((84, 10), lambda i: (0, 0)),          # fc3 W
                pl.BlockSpec((1, 10), lambda i: (0, 0)),           # fc3 b
            ],
            out_specs=pl.BlockSpec((1, 1, 10), lambda i: (i, 0, 0)),
            scratch_shapes=[
                pltpu.VMEM((14, 84), jnp.float32),   # pool1 output
                pltpu.VMEM((5, 80), jnp.float32),    # pool2 output
            ],
        ),
        compiler_params=pltpu.CompilerParams(
            dimension_semantics=("parallel",)),        # batch split across TCs
    )(x_rows,
      prepared["w1"], prepared["b1"], prepared["w2"], prepared["b2"],
      prepared["f1"], prepared["fb1"], prepared["f2"], prepared["fb2"],
      prepared["f3"], prepared["fb3"])
    return out.reshape(n, 10)


# ------------------------------ Parameters ---------------------------------- #

def init_params(key):
    ks = jax.random.split(key, 10)

    def u(k, shape, fan_in):
        bound = 1.0 / jnp.sqrt(fan_in)
        return jax.random.uniform(k, shape, jnp.float32, -bound, bound)

    return {
        "conv1_w": u(ks[0], (6, 3, 5, 5), 3 * 5 * 5),
        "conv1_b": u(ks[1], (6,), 3 * 5 * 5),
        "conv2_w": u(ks[2], (16, 6, 5, 5), 6 * 5 * 5),
        "conv2_b": u(ks[3], (16,), 6 * 5 * 5),
        "fc1_w": u(ks[4], (120, 400), 400),
        "fc1_b": u(ks[5], (120,), 400),
        "fc2_w": u(ks[6], (84, 120), 120),
        "fc2_b": u(ks[7], (84,), 120),
        "fc3_w": u(ks[8], (10, 84), 84),
        "fc3_b": u(ks[9], (10,), 84),
    }


def prepare_params(params):
    """One-time host-side prep: Toeplitz-expand conv weights, fold the NCHW
    flatten permutation into fc1, transpose FC weights, cast weights to bf16."""
    def n32(a):
        return np.asarray(a, np.float32)

    def conv_toeplitz(w, width):
        # w: (Cout, Cin, 5, 5); input rows laid out [ci*width + w'].
        # M[i, ci*width + w'+j, co*OW + w'] = w[co, ci, i, j]
        cout, cin, kh, kw = w.shape
        ow = width - kw + 1
        m = np.zeros((kh, cin * width, cout * ow), np.float32)
        wo = np.arange(ow)
        for i in range(kh):
            for j in range(kw):
                for ci in range(cin):
                    for co in range(cout):
                        m[i, ci * width + wo + j, co * ow + wo] = w[co, ci, i, j]
        return m

    w1, b1 = n32(params["conv1_w"]), n32(params["conv1_b"])
    w2, b2 = n32(params["conv2_w"]), n32(params["conv2_b"])
    f1, fb1 = n32(params["fc1_w"]), n32(params["fc1_b"])
    f2, fb2 = n32(params["fc2_w"]), n32(params["fc2_b"])
    f3, fb3 = n32(params["fc3_w"]), n32(params["fc3_b"])

    m1 = conv_toeplitz(w1, 32)                                   # (5, 96, 168)
    m2 = conv_toeplitz(w2, 14)                                   # (5, 84, 160)
    # fc1: PyTorch flatten index co*25 + h*5 + w  ->  f1p[h, co*5 + w, o]
    f1p = f1.reshape(120, 16, 5, 5).transpose(2, 1, 3, 0).reshape(5, 80, 120)

    return {
        "w1": jnp.asarray(m1, jnp.bfloat16),
        "b1": jnp.asarray(np.repeat(b1, 28).reshape(1, 168), jnp.float32),
        "w2": jnp.asarray(m2, jnp.bfloat16),
        "b2": jnp.asarray(np.repeat(b2, 10).reshape(1, 160), jnp.float32),
        "f1": jnp.asarray(f1p, jnp.bfloat16),
        "fb1": jnp.asarray(fb1.reshape(1, 120), jnp.float32),
        "f2": jnp.asarray(f2.T, jnp.bfloat16),                   # (120, 84)
        "fb2": jnp.asarray(fb2.reshape(1, 84), jnp.float32),
        "f3": jnp.asarray(f3.T, jnp.bfloat16),                   # (84, 10)
        "fb3": jnp.asarray(fb3.reshape(1, 10), jnp.float32),
    }


# --------------------------- pure-JAX reference ----------------------------- #

def reference_forward(params, x):
    """f32 reference (weights rounded to bf16 to match the kernel's weights)."""
    def rb(a):
        return a.astype(jnp.bfloat16).astype(jnp.float32)

    def conv(x, w, b):
        y = lax.conv_general_dilated(
            x, rb(w), window_strides=(1, 1), padding="VALID",
            dimension_numbers=("NCHW", "OIHW", "NCHW"))
        return y + b.reshape(1, -1, 1, 1)

    def pool(x):
        return lax.reduce_window(x, -jnp.inf, lax.max,
                                 (1, 1, 2, 2), (1, 1, 2, 2), "VALID")

    x = pool(jnp.maximum(conv(x, params["conv1_w"], params["conv1_b"]), 0.0))
    x = pool(jnp.maximum(conv(x, params["conv2_w"], params["conv2_b"]), 0.0))
    x = x.reshape(x.shape[0], -1)
    x = jnp.maximum(x @ rb(params["fc1_w"]).T + params["fc1_b"], 0.0)
    x = jnp.maximum(x @ rb(params["fc2_w"]).T + params["fc2_b"], 0.0)
    return x @ rb(params["fc3_w"]).T + params["fc3_b"]


# --------------------------------- Main -------------------------------------- #

if __name__ == "__main__":
    key = jax.random.PRNGKey(0)
    k_params, k_x = jax.random.split(key)
    params = init_params(k_params)
    prepared = prepare_params(params)     # one-time weight prep (host side)

    # Forward implies 32x32 spatial input (16*5*5 flatten); small batch of 2.
    x = jax.random.normal(k_x, (2, 3, 32, 32), jnp.float32)

    out = jax.jit(net_forward)(prepared, x)
    out = jax.block_until_ready(out)
    assert out.shape == (2, 10), out.shape
    assert bool(jnp.all(jnp.isfinite(out)))

    # Sanity check vs. a pure-JAX reference (bf16 activation rounding allowed).
    ref = reference_forward(params, x)
    err = float(jnp.max(jnp.abs(out - ref)))
    tol = 2e-2 + 0.1 * float(jnp.max(jnp.abs(ref)))
    assert err < tol, (err, tol)

    print("KERNEL_OK")
</pallas_src>

<mosaic_0001>
module attributes {stable_mosaic.version = 11 : i64} {
  func.func @_net_kernel(%arg0: i32, %arg1: memref<1x32x96xf32, #tpu.memory_space<vmem>>, %arg2: memref<5x96x168xbf16, #tpu.memory_space<vmem>>, %arg3: memref<1x168xf32, #tpu.memory_space<vmem>>, %arg4: memref<5x84x160xbf16, #tpu.memory_space<vmem>>, %arg5: memref<1x160xf32, #tpu.memory_space<vmem>>, %arg6: memref<5x80x120xbf16, #tpu.memory_space<vmem>>, %arg7: memref<1x120xf32, #tpu.memory_space<vmem>>, %arg8: memref<120x84xbf16, #tpu.memory_space<vmem>>, %arg9: memref<1x84xf32, #tpu.memory_space<vmem>>, %arg10: memref<84x10xbf16, #tpu.memory_space<vmem>>, %arg11: memref<1x10xf32, #tpu.memory_space<vmem>>, %arg12: memref<1x1x10xf32, #tpu.memory_space<vmem>>, %arg13: memref<14x84xf32, #tpu.memory_space<vmem>>, %arg14: memref<5x80xf32, #tpu.memory_space<vmem>>) attributes {dimension_semantics = [#tpu.dimension_semantics<parallel>], iteration_bounds = array<i64: 2>, scalar_prefetch = 0 : i64, scratch_operands = 2 : i64, tpu.core_type = #tpu.core_type<tc>, window_params = [{transform_indices = @transform_0, window_bounds = array<i64: 1, 32, 96>}, {pipeline_mode = #tpu.pipeline_mode<synchronous>, transform_indices = @transform_1, window_bounds = array<i64: 5, 96, 168>}, {pipeline_mode = #tpu.pipeline_mode<synchronous>, transform_indices = @transform_2, window_bounds = array<i64: 1, 168>}, {pipeline_mode = #tpu.pipeline_mode<synchronous>, transform_indices = @transform_3, window_bounds = array<i64: 5, 84, 160>}, {pipeline_mode = #tpu.pipeline_mode<synchronous>, transform_indices = @transform_4, window_bounds = array<i64: 1, 160>}, {pipeline_mode = #tpu.pipeline_mode<synchronous>, transform_indices = @transform_5, window_bounds = array<i64: 5, 80, 120>}, {pipeline_mode = #tpu.pipeline_mode<synchronous>, transform_indices = @transform_6, window_bounds = array<i64: 1, 120>}, {pipeline_mode = #tpu.pipeline_mode<synchronous>, transform_indices = @transform_7, window_bounds = array<i64: 120, 84>}, {pipeline_mode = #tpu.pipeline_mode<synchronous>, transform_indices = @transform_8, window_bounds = array<i64: 1, 84>}, {pipeline_mode = #tpu.pipeline_mode<synchronous>, transform_indices = @transform_9, window_bounds = array<i64: 84, 10>}, {pipeline_mode = #tpu.pipeline_mode<synchronous>, transform_indices = @transform_10, window_bounds = array<i64: 1, 10>}, {transform_indices = @transform_11, window_bounds = array<i64: 1, 1, 10>}]} {
    %c0 = arith.constant 0 : index
    %c0_0 = arith.constant 0 : index
    %c0_1 = arith.constant 0 : index
    %0 = vector.load %arg1[%c0, %c0_0, %c0_1] : memref<1x32x96xf32, #tpu.memory_space<vmem>>, vector<1x28x96xf32>
    %1 = vector.shape_cast %0 : vector<1x28x96xf32> to vector<28x96xf32>
    %2 = arith.truncf %1 : vector<28x96xf32> to vector<28x96xbf16>
    %c0_2 = arith.constant 0 : index
    %c0_3 = arith.constant 0 : index
    %c0_4 = arith.constant 0 : index
    %3 = vector.load %arg2[%c0_2, %c0_3, %c0_4] : memref<5x96x168xbf16, #tpu.memory_space<vmem>>, vector<1x96x168xbf16>
    %4 = vector.shape_cast %3 : vector<1x96x168xbf16> to vector<96x168xbf16>
    %cst = arith.constant dense<0.000000e+00> : vector<28x168xf32>
    %5 = tpu.matmul %2, %4, %cst {dimension_numbers = #tpu.dot_dimension_numbers<[1], [0], [0], [1], [0, 0, 1, 1], [], []>} : vector<28x96xbf16>, vector<96x168xbf16>, vector<28x168xf32> -> vector<28x168xf32>
    %c0_5 = arith.constant 0 : index
    %c1 = arith.constant 1 : index
    %c0_6 = arith.constant 0 : index
    %6 = vector.load %arg1[%c0_5, %c1, %c0_6] : memref<1x32x96xf32, #tpu.memory_space<vmem>>, vector<1x28x96xf32>
    %7 = vector.shape_cast %6 : vector<1x28x96xf32> to vector<28x96xf32>
    %8 = arith.truncf %7 : vector<28x96xf32> to vector<28x96xbf16>
    %c1_7 = arith.constant 1 : index
    %c0_8 = arith.constant 0 : index
    %c0_9 = arith.constant 0 : index
    %9 = vector.load %arg2[%c1_7, %c0_8, %c0_9] : memref<5x96x168xbf16, #tpu.memory_space<vmem>>, vector<1x96x168xbf16>
    %10 = vector.shape_cast %9 : vector<1x96x168xbf16> to vector<96x168xbf16>
    %cst_10 = arith.constant dense<0.000000e+00> : vector<28x168xf32>
    %11 = tpu.matmul %8, %10, %cst_10 {dimension_numbers = #tpu.dot_dimension_numbers<[1], [0], [0], [1], [0, 0, 1, 1], [], []>} : vector<28x96xbf16>, vector<96x168xbf16>, vector<28x168xf32> -> vector<28x168xf32>
    %12 = arith.addf %5, %11 : vector<28x168xf32>
    %c0_11 = arith.constant 0 : index
    %c2 = arith.constant 2 : index
    %c0_12 = arith.constant 0 : index
    %13 = vector.load %arg1[%c0_11, %c2, %c0_12] : memref<1x32x96xf32, #tpu.memory_space<vmem>>, vector<1x28x96xf32>
    %14 = vector.shape_cast %13 : vector<1x28x96xf32> to vector<28x96xf32>
    %15 = arith.truncf %14 : vector<28x96xf32> to vector<28x96xbf16>
    %c2_13 = arith.constant 2 : index
    %c0_14 = arith.constant 0 : index
    %c0_15 = arith.constant 0 : index
    %16 = vector.load %arg2[%c2_13, %c0_14, %c0_15] : memref<5x96x168xbf16, #tpu.memory_space<vmem>>, vector<1x96x168xbf16>
    %17 = vector.shape_cast %16 : vector<1x96x168xbf16> to vector<96x168xbf16>
    %cst_16 = arith.constant dense<0.000000e+00> : vector<28x168xf32>
    %18 = tpu.matmul %15, %17, %cst_16 {dimension_numbers = #tpu.dot_dimension_numbers<[1], [0], [0], [1], [0, 0, 1, 1], [], []>} : vector<28x96xbf16>, vector<96x168xbf16>, vector<28x168xf32> -> vector<28x168xf32>
    %19 = arith.addf %12, %18 : vector<28x168xf32>
    %c0_17 = arith.constant 0 : index
    %c3 = arith.constant 3 : index
    %c0_18 = arith.constant 0 : index
    %20 = vector.load %arg1[%c0_17, %c3, %c0_18] : memref<1x32x96xf32, #tpu.memory_space<vmem>>, vector<1x28x96xf32>
    %21 = vector.shape_cast %20 : vector<1x28x96xf32> to vector<28x96xf32>
    %22 = arith.truncf %21 : vector<28x96xf32> to vector<28x96xbf16>
    %c3_19 = arith.constant 3 : index
    %c0_20 = arith.constant 0 : index
    %c0_21 = arith.constant 0 : index
    %23 = vector.load %arg2[%c3_19, %c0_20, %c0_21] : memref<5x96x168xbf16, #tpu.memory_space<vmem>>, vector<1x96x168xbf16>
    %24 = vector.shape_cast %23 : vector<1x96x168xbf16> to vector<96x168xbf16>
    %cst_22 = arith.constant dense<0.000000e+00> : vector<28x168xf32>
    %25 = tpu.matmul %22, %24, %cst_22 {dimension_numbers = #tpu.dot_dimension_numbers<[1], [0], [0], [1], [0, 0, 1, 1], [], []>} : vector<28x96xbf16>, vector<96x168xbf16>, vector<28x168xf32> -> vector<28x168xf32>
    %26 = arith.addf %19, %25 : vector<28x168xf32>
    %c0_23 = arith.constant 0 : index
    %c4 = arith.constant 4 : index
    %c0_24 = arith.constant 0 : index
    %27 = vector.load %arg1[%c0_23, %c4, %c0_24] : memref<1x32x96xf32, #tpu.memory_space<vmem>>, vector<1x28x96xf32>
    %28 = vector.shape_cast %27 : vector<1x28x96xf32> to vector<28x96xf32>
    %29 = arith.truncf %28 : vector<28x96xf32> to vector<28x96xbf16>
    %c4_25 = arith.constant 4 : index
    %c0_26 = arith.constant 0 : index
    %c0_27 = arith.constant 0 : index
    %30 = vector.load %arg2[%c4_25, %c0_26, %c0_27] : memref<5x96x168xbf16, #tpu.memory_space<vmem>>, vector<1x96x168xbf16>
    %31 = vector.shape_cast %30 : vector<1x96x168xbf16> to vector<96x168xbf16>
    %cst_28 = arith.constant dense<0.000000e+00> : vector<28x168xf32>
    %32 = tpu.matmul %29, %31, %cst_28 {dimension_numbers = #tpu.dot_dimension_numbers<[1], [0], [0], [1], [0, 0, 1, 1], [], []>} : vector<28x96xbf16>, vector<96x168xbf16>, vector<28x168xf32> -> vector<28x168xf32>
    %33 = arith.addf %26, %32 : vector<28x168xf32>
    %c0_29 = arith.constant 0 : index
    %c0_30 = arith.constant 0 : index
    %34 = vector.load %arg3[%c0_29, %c0_30] : memref<1x168xf32, #tpu.memory_space<vmem>>, vector<1x168xf32>
    %35 = vector.broadcast %34 : vector<1x168xf32> to vector<28x168xf32>
    %36 = arith.addf %33, %35 : vector<28x168xf32>
    %cst_31 = arith.constant 0.000000e+00 : f32
    %37 = vector.broadcast %cst_31 : f32 to vector<28x168xf32>
    %38 = arith.maximumf %36, %37 : vector<28x168xf32>
    %39 = arith.truncf %38 : vector<28x168xf32> to vector<28x168xbf16>
    %40 = tpu.iota {dimensions = array<i32: 0>} : vector<14x28xi32>
    %41 = tpu.iota {dimensions = array<i32: 1>} : vector<14x28xi32>
    %c2_i32 = arith.constant 2 : i32
    %42 = vector.broadcast %c2_i32 : i32 to vector<14x28xi32>
    %43 = arith.muli %42, %40 : vector<14x28xi32>
    %c0_i32 = arith.constant 0 : i32
    %44 = vector.broadcast %c0_i32 : i32 to vector<14x28xi32>
    %45 = arith.addi %43, %44 : vector<14x28xi32>
    %46 = arith.cmpi eq, %41, %45 : vector<14x28xi32>
    %cst_32 = arith.constant 1.000000e+00 : f32
    %cst_33 = arith.constant 0.000000e+00 : f32
    %47 = vector.broadcast %cst_32 : f32 to vector<14x28xf32>
    %48 = vector.broadcast %cst_33 : f32 to vector<14x28xf32>
    %49 = arith.select %46, %47, %48 : vector<14x28xi1>, vector<14x28xf32>
    %50 = arith.truncf %49 : vector<14x28xf32> to vector<14x28xbf16>
    %51 = tpu.iota {dimensions = array<i32: 0>} : vector<14x28xi32>
    %52 = tpu.iota {dimensions = array<i32: 1>} : vector<14x28xi32>
    %c2_i32_34 = arith.constant 2 : i32
    %53 = vector.broadcast %c2_i32_34 : i32 to vector<14x28xi32>
    %54 = arith.muli %53, %51 : vector<14x28xi32>
    %c1_i32 = arith.constant 1 : i32
    %55 = vector.broadcast %c1_i32 : i32 to vector<14x28xi32>
    %56 = arith.addi %54, %55 : vector<14x28xi32>
    %57 = arith.cmpi eq, %52, %56 : vector<14x28xi32>
    %cst_35 = arith.constant 1.000000e+00 : f32
    %cst_36 = arith.constant 0.000000e+00 : f32
    %58 = vector.broadcast %cst_35 : f32 to vector<14x28xf32>
    %59 = vector.broadcast %cst_36 : f32 to vector<14x28xf32>
    %60 = arith.select %57, %58, %59 : vector<14x28xi1>, vector<14x28xf32>
    %61 = arith.truncf %60 : vector<14x28xf32> to vector<14x28xbf16>
    %cst_37 = arith.constant dense<0.000000e+00> : vector<14x168xf32>
    %62 = tpu.matmul %50, %39, %cst_37 {dimension_numbers = #tpu.dot_dimension_numbers<[1], [0], [0], [1], [0, 0, 1, 1], [], []>} : vector<14x28xbf16>, vector<28x168xbf16>, vector<14x168xf32> -> vector<14x168xf32>
    %cst_38 = arith.constant dense<0.000000e+00> : vector<14x168xf32>
    %63 = tpu.matmul %61, %39, %cst_38 {dimension_numbers = #tpu.dot_dimension_numbers<[1], [0], [0], [1], [0, 0, 1, 1], [], []>} : vector<14x28xbf16>, vector<28x168xbf16>, vector<14x168xf32> -> vector<14x168xf32>
    %64 = arith.maximumf %62, %63 : vector<14x168xf32>
    %65 = arith.truncf %64 : vector<14x168xf32> to vector<14x168xbf16>
    %66 = tpu.iota {dimensions = array<i32: 0>} : vector<168x84xi32>
    %67 = tpu.iota {dimensions = array<i32: 1>} : vector<168x84xi32>
    %c2_i32_39 = arith.constant 2 : i32
    %68 = vector.broadcast %c2_i32_39 : i32 to vector<168x84xi32>
    %69 = arith.muli %68, %67 : vector<168x84xi32>
    %c0_i32_40 = arith.constant 0 : i32
    %70 = vector.broadcast %c0_i32_40 : i32 to vector<168x84xi32>
    %71 = arith.addi %69, %70 : vector<168x84xi32>
    %72 = arith.cmpi eq, %66, %71 : vector<168x84xi32>
    %cst_41 = arith.constant 1.000000e+00 : f32
    %cst_42 = arith.constant 0.000000e+00 : f32
    %73 = vector.broadcast %cst_41 : f32 to vector<168x84xf32>
    %74 = vector.broadcast %cst_42 : f32 to vector<168x84xf32>
    %75 = arith.select %72, %73, %74 : vector<168x84xi1>, vector<168x84xf32>
    %76 = arith.truncf %75 : vector<168x84xf32> to vector<168x84xbf16>
    %77 = tpu.iota {dimensions = array<i32: 0>} : vector<168x84xi32>
    %78 = tpu.iota {dimensions = array<i32: 1>} : vector<168x84xi32>
    %c2_i32_43 = arith.constant 2 : i32
    %79 = vector.broadcast %c2_i32_43 : i32 to vector<168x84xi32>
    %80 = arith.muli %79, %78 : vector<168x84xi32>
    %c1_i32_44 = arith.constant 1 : i32
    %81 = vector.broadcast %c1_i32_44 : i32 to vector<168x84xi32>
    %82 = arith.addi %80, %81 : vector<168x84xi32>
    %83 = arith.cmpi eq, %77, %82 : vector<168x84xi32>
    %cst_45 = arith.constant 1.000000e+00 : f32
    %cst_46 = arith.constant 0.000000e+00 : f32
    %84 = vector.broadcast %cst_45 : f32 to vector<168x84xf32>
    %85 = vector.broadcast %cst_46 : f32 to vector<168x84xf32>
    %86 = arith.select %83, %84, %85 : vector<168x84xi1>, vector<168x84xf32>
    %87 = arith.truncf %86 : vector<168x84xf32> to vector<168x84xbf16>
    %cst_47 = arith.constant dense<0.000000e+00> : vector<14x84xf32>
    %88 = tpu.matmul %65, %76, %cst_47 {dimension_numbers = #tpu.dot_dimension_numbers<[1], [0], [0], [1], [0, 0, 1, 1], [], []>} : vector<14x168xbf16>, vector<168x84xbf16>, vector<14x84xf32> -> vector<14x84xf32>
    %cst_48 = arith.constant dense<0.000000e+00> : vector<14x84xf32>
    %89 = tpu.matmul %65, %87, %cst_48 {dimension_numbers = #tpu.dot_dimension_numbers<[1], [0], [0], [1], [0, 0, 1, 1], [], []>} : vector<14x168xbf16>, vector<168x84xbf16>, vector<14x84xf32> -> vector<14x84xf32>
    %90 = arith.maximumf %88, %89 : vector<14x84xf32>
    %c0_49 = arith.constant 0 : index
    %c0_50 = arith.constant 0 : index
    %91 = vector.load %arg13[%c0_49, %c0_50] : memref<14x84xf32, #tpu.memory_space<vmem>>, vector<14x84xf32>
    tpu.vector_store %arg13[%c0_49, %c0_50], %90 {strides = array<i32>} : memref<14x84xf32, #tpu.memory_space<vmem>>, vector<14x84xf32>,
    %c0_51 = arith.constant 0 : index
    %c0_52 = arith.constant 0 : index
    %92 = vector.load %arg13[%c0_51, %c0_52] : memref<14x84xf32, #tpu.memory_space<vmem>>, vector<10x84xf32>
    %93 = arith.truncf %92 : vector<10x84xf32> to vector<10x84xbf16>
    %c0_53 = arith.constant 0 : index
    %c0_54 = arith.constant 0 : index
    %c0_55 = arith.constant 0 : index
    %94 = vector.load %arg4[%c0_53, %c0_54, %c0_55] : memref<5x84x160xbf16, #tpu.memory_space<vmem>>, vector<1x84x160xbf16>
    %95 = vector.shape_cast %94 : vector<1x84x160xbf16> to vector<84x160xbf16>
    %cst_56 = arith.constant dense<0.000000e+00> : vector<10x160xf32>
    %96 = tpu.matmul %93, %95, %cst_56 {dimension_numbers = #tpu.dot_dimension_numbers<[1], [0], [0], [1], [0, 0, 1, 1], [], []>} : vector<10x84xbf16>, vector<84x160xbf16>, vector<10x160xf32> -> vector<10x160xf32>
    %c1_57 = arith.constant 1 : index
    %c0_58 = arith.constant 0 : index
    %97 = vector.load %arg13[%c1_57, %c0_58] : memref<14x84xf32, #tpu.memory_space<vmem>>, vector<10x84xf32>
    %98 = arith.truncf %97 : vector<10x84xf32> to vector<10x84xbf16>
    %c1_59 = arith.constant 1 : index
    %c0_60 = arith.constant 0 : index
    %c0_61 = arith.constant 0 : index
    %99 = vector.load %arg4[%c1_59, %c0_60, %c0_61] : memref<5x84x160xbf16, #tpu.memory_space<vmem>>, vector<1x84x160xbf16>
    %100 = vector.shape_cast %99 : vector<1x84x160xbf16> to vector<84x160xbf16>
    %cst_62 = arith.constant dense<0.000000e+00> : vector<10x160xf32>
    %101 = tpu.matmul %98, %100, %cst_62 {dimension_numbers = #tpu.dot_dimension_numbers<[1], [0], [0], [1], [0, 0, 1, 1], [], []>} : vector<10x84xbf16>, vector<84x160xbf16>, vector<10x160xf32> -> vector<10x160xf32>
    %102 = arith.addf %96, %101 : vector<10x160xf32>
    %c2_63 = arith.constant 2 : index
    %c0_64 = arith.constant 0 : index
    %103 = vector.load %arg13[%c2_63, %c0_64] : memref<14x84xf32, #tpu.memory_space<vmem>>, vector<10x84xf32>
    %104 = arith.truncf %103 : vector<10x84xf32> to vector<10x84xbf16>
    %c2_65 = arith.constant 2 : index
    %c0_66 = arith.constant 0 : index
    %c0_67 = arith.constant 0 : index
    %105 = vector.load %arg4[%c2_65, %c0_66, %c0_67] : memref<5x84x160xbf16, #tpu.memory_space<vmem>>, vector<1x84x160xbf16>
    %106 = vector.shape_cast %105 : vector<1x84x160xbf16> to vector<84x160xbf16>
    %cst_68 = arith.constant dense<0.000000e+00> : vector<10x160xf32>
    %107 = tpu.matmul %104, %106, %cst_68 {dimension_numbers = #tpu.dot_dimension_numbers<[1], [0], [0], [1], [0, 0, 1, 1], [], []>} : vector<10x84xbf16>, vector<84x160xbf16>, vector<10x160xf32> -> vector<10x160xf32>
    %108 = arith.addf %102, %107 : vector<10x160xf32>
    %c3_69 = arith.constant 3 : index
    %c0_70 = arith.constant 0 : index
    %109 = vector.load %arg13[%c3_69, %c0_70] : memref<14x84xf32, #tpu.memory_space<vmem>>, vector<10x84xf32>
    %110 = arith.truncf %109 : vector<10x84xf32> to vector<10x84xbf16>
    %c3_71 = arith.constant 3 : index
    %c0_72 = arith.constant 0 : index
    %c0_73 = arith.constant 0 : index
    %111 = vector.load %arg4[%c3_71, %c0_72, %c0_73] : memref<5x84x160xbf16, #tpu.memory_space<vmem>>, vector<1x84x160xbf16>
    %112 = vector.shape_cast %111 : vector<1x84x160xbf16> to vector<84x160xbf16>
    %cst_74 = arith.constant dense<0.000000e+00> : vector<10x160xf32>
    %113 = tpu.matmul %110, %112, %cst_74 {dimension_numbers = #tpu.dot_dimension_numbers<[1], [0], [0], [1], [0, 0, 1, 1], [], []>} : vector<10x84xbf16>, vector<84x160xbf16>, vector<10x160xf32> -> vector<10x160xf32>
    %114 = arith.addf %108, %113 : vector<10x160xf32>
    %c4_75 = arith.constant 4 : index
    %c0_76 = arith.constant 0 : index
    %115 = vector.load %arg13[%c4_75, %c0_76] : memref<14x84xf32, #tpu.memory_space<vmem>>, vector<10x84xf32>
    %116 = arith.truncf %115 : vector<10x84xf32> to vector<10x84xbf16>
    %c4_77 = arith.constant 4 : index
    %c0_78 = arith.constant 0 : index
    %c0_79 = arith.constant 0 : index
    %117 = vector.load %arg4[%c4_77, %c0_78, %c0_79] : memref<5x84x160xbf16, #tpu.memory_space<vmem>>, vector<1x84x160xbf16>
    %118 = vector.shape_cast %117 : vector<1x84x160xbf16> to vector<84x160xbf16>
    %cst_80 = arith.constant dense<0.000000e+00> : vector<10x160xf32>
    %119 = tpu.matmul %116, %118, %cst_80 {dimension_numbers = #tpu.dot_dimension_numbers<[1], [0], [0], [1], [0, 0, 1, 1], [], []>} : vector<10x84xbf16>, vector<84x160xbf16>, vector<10x160xf32> -> vector<10x160xf32>
    %120 = arith.addf %114, %119 : vector<10x160xf32>
    %c0_81 = arith.constant 0 : index
    %c0_82 = arith.constant 0 : index
    %121 = vector.load %arg5[%c0_81, %c0_82] : memref<1x160xf32, #tpu.memory_space<vmem>>, vector<1x160xf32>
    %122 = vector.broadcast %121 : vector<1x160xf32> to vector<10x160xf32>
    %123 = arith.addf %120, %122 : vector<10x160xf32>
    %cst_83 = arith.constant 0.000000e+00 : f32
    %124 = vector.broadcast %cst_83 : f32 to vector<10x160xf32>
    %125 = arith.maximumf %123, %124 : vector<10x160xf32>
    %126 = arith.truncf %125 : vector<10x160xf32> to vector<10x160xbf16>
    %127 = tpu.iota {dimensions = array<i32: 0>} : vector<5x10xi32>
    %128 = tpu.iota {dimensions = array<i32: 1>} : vector<5x10xi32>
    %c2_i32_84 = arith.constant 2 : i32
    %129 = vector.broadcast %c2_i32_84 : i32 to vector<5x10xi32>
    %130 = arith.muli %129, %127 : vector<5x10xi32>
    %c0_i32_85 = arith.constant 0 : i32
    %131 = vector.broadcast %c0_i32_85 : i32 to vector<5x10xi32>
    %132 = arith.addi %130, %131 : vector<5x10xi32>
    %133 = arith.cmpi eq, %128, %132 : vector<5x10xi32>
    %cst_86 = arith.constant 1.000000e+00 : f32
    %cst_87 = arith.constant 0.000000e+00 : f32
    %134 = vector.broadcast %cst_86 : f32 to vector<5x10xf32>
    %135 = vector.broadcast %cst_87 : f32 to vector<5x10xf32>
    %136 = arith.select %133, %134, %135 : vector<5x10xi1>, vector<5x10xf32>
    %137 = arith.truncf %136 : vector<5x10xf32> to vector<5x10xbf16>
    %138 = tpu.iota {dimensions = array<i32: 0>} : vector<5x10xi32>
    %139 = tpu.iota {dimensions = array<i32: 1>} : vector<5x10xi32>
    %c2_i32_88 = arith.constant 2 : i32
    %140 = vector.broadcast %c2_i32_88 : i32 to vector<5x10xi32>
    %141 = arith.muli %140, %138 : vector<5x10xi32>
    %c1_i32_89 = arith.constant 1 : i32
    %142 = vector.broadcast %c1_i32_89 : i32 to vector<5x10xi32>
    %143 = arith.addi %141, %142 : vector<5x10xi32>
    %144 = arith.cmpi eq, %139, %143 : vector<5x10xi32>
    %cst_90 = arith.constant 1.000000e+00 : f32
    %cst_91 = arith.constant 0.000000e+00 : f32
    %145 = vector.broadcast %cst_90 : f32 to vector<5x10xf32>
    %146 = vector.broadcast %cst_91 : f32 to vector<5x10xf32>
    %147 = arith.select %144, %145, %146 : vector<5x10xi1>, vector<5x10xf32>
    %148 = arith.truncf %147 : vector<5x10xf32> to vector<5x10xbf16>
    %cst_92 = arith.constant dense<0.000000e+00> : vector<5x160xf32>
    %149 = tpu.matmul %137, %126, %cst_92 {dimension_numbers = #tpu.dot_dimension_numbers<[1], [0], [0], [1], [0, 0, 1, 1], [], []>} : vector<5x10xbf16>, vector<10x160xbf16>, vector<5x160xf32> -> vector<5x160xf32>
    %cst_93 = arith.constant dense<0.000000e+00> : vector<5x160xf32>
    %150 = tpu.matmul %148, %126, %cst_93 {dimension_numbers = #tpu.dot_dimension_numbers<[1], [0], [0], [1], [0, 0, 1, 1], [], []>} : vector<5x10xbf16>, vector<10x160xbf16>, vector<5x160xf32> -> vector<5x160xf32>
    %151 = arith.maximumf %149, %150 : vector<5x160xf32>
    %152 = arith.truncf %151 : vector<5x160xf32> to vector<5x160xbf16>
    %153 = tpu.iota {dimensions = array<i32: 0>} : vector<160x80xi32>
    %154 = tpu.iota {dimensions = array<i32: 1>} : vector<160x80xi32>
    %c2_i32_94 = arith.constant 2 : i32
    %155 = vector.broadcast %c2_i32_94 : i32 to vector<160x80xi32>
    %156 = arith.muli %155, %154 : vector<160x80xi32>
    %c0_i32_95 = arith.constant 0 : i32
    %157 = vector.broadcast %c0_i32_95 : i32 to vector<160x80xi32>
    %158 = arith.addi %156, %157 : vector<160x80xi32>
    %159 = arith.cmpi eq, %153, %158 : vector<160x80xi32>
    %cst_96 = arith.constant 1.000000e+00 : f32
    %cst_97 = arith.constant 0.000000e+00 : f32
    %160 = vector.broadcast %cst_96 : f32 to vector<160x80xf32>
    %161 = vector.broadcast %cst_97 : f32 to vector<160x80xf32>
    %162 = arith.select %159, %160, %161 : vector<160x80xi1>, vector<160x80xf32>
    %163 = arith.truncf %162 : vector<160x80xf32> to vector<160x80xbf16>
    %164 = tpu.iota {dimensions = array<i32: 0>} : vector<160x80xi32>
    %165 = tpu.iota {dimensions = array<i32: 1>} : vector<160x80xi32>
    %c2_i32_98 = arith.constant 2 : i32
    %166 = vector.broadcast %c2_i32_98 : i32 to vector<160x80xi32>
    %167 = arith.muli %166, %165 : vector<160x80xi32>
    %c1_i32_99 = arith.constant 1 : i32
    %168 = vector.broadcast %c1_i32_99 : i32 to vector<160x80xi32>
    %169 = arith.addi %167, %168 : vector<160x80xi32>
    %170 = arith.cmpi eq, %164, %169 : vector<160x80xi32>
    %cst_100 = arith.constant 1.000000e+00 : f32
    %cst_101 = arith.constant 0.000000e+00 : f32
    %171 = vector.broadcast %cst_100 : f32 to vector<160x80xf32>
    %172 = vector.broadcast %cst_101 : f32 to vector<160x80xf32>
    %173 = arith.select %170, %171, %172 : vector<160x80xi1>, vector<160x80xf32>
    %174 = arith.truncf %173 : vector<160x80xf32> to vector<160x80xbf16>
    %cst_102 = arith.constant dense<0.000000e+00> : vector<5x80xf32>
    %175 = tpu.matmul %152, %163, %cst_102 {dimension_numbers = #tpu.dot_dimension_numbers<[1], [0], [0], [1], [0, 0, 1, 1], [], []>} : vector<5x160xbf16>, vector<160x80xbf16>, vector<5x80xf32> -> vector<5x80xf32>
    %cst_103 = arith.constant dense<0.000000e+00> : vector<5x80xf32>
    %176 = tpu.matmul %152, %174, %cst_103 {dimension_numbers = #tpu.dot_dimension_numbers<[1], [0], [0], [1], [0, 0, 1, 1], [], []>} : vector<5x160xbf16>, vector<160x80xbf16>, vector<5x80xf32> -> vector<5x80xf32>
    %177 = arith.maximumf %175, %176 : vector<5x80xf32>
    %c0_104 = arith.constant 0 : index
    %c0_105 = arith.constant 0 : index
    %178 = vector.load %arg14[%c0_104, %c0_105] : memref<5x80xf32, #tpu.memory_space<vmem>>, vector<5x80xf32>
    tpu.vector_store %arg14[%c0_104, %c0_105], %177 {strides = array<i32>} : memref<5x80xf32, #tpu.memory_space<vmem>>, vector<5x80xf32>,
    %c0_106 = arith.constant 0 : index
    %c0_107 = arith.constant 0 : index
    %179 = vector.load %arg14[%c0_106, %c0_107] : memref<5x80xf32, #tpu.memory_space<vmem>>, vector<1x80xf32>
    %180 = arith.truncf %179 : vector<1x80xf32> to vector<1x80xbf16>
    %c0_108 = arith.constant 0 : index
    %c0_109 = arith.constant 0 : index
    %c0_110 = arith.constant 0 : index
    %181 = vector.load %arg6[%c0_108, %c0_109, %c0_110] : memref<5x80x120xbf16, #tpu.memory_space<vmem>>, vector<1x80x120xbf16>
    %182 = vector.shape_cast %181 : vector<1x80x120xbf16> to vector<80x120xbf16>
    %cst_111 = arith.constant dense<0.000000e+00> : vector<1x120xf32>
    %183 = tpu.matmul %180, %182, %cst_111 {dimension_numbers = #tpu.dot_dimension_numbers<[1], [0], [0], [1], [0, 0, 1, 1], [], []>} : vector<1x80xbf16>, vector<80x120xbf16>, vector<1x120xf32> -> vector<1x120xf32>
    %c1_112 = arith.constant 1 : index
    %c0_113 = arith.constant 0 : index
    %184 = vector.load %arg14[%c1_112, %c0_113] : memref<5x80xf32, #tpu.memory_space<vmem>>, vector<1x80xf32>
    %185 = arith.truncf %184 : vector<1x80xf32> to vector<1x80xbf16>
    %c1_114 = arith.constant 1 : index
    %c0_115 = arith.constant 0 : index
    %c0_116 = arith.constant 0 : index
    %186 = vector.load %arg6[%c1_114, %c0_115, %c0_116] : memref<5x80x120xbf16, #tpu.memory_space<vmem>>, vector<1x80x120xbf16>
    %187 = vector.shape_cast %186 : vector<1x80x120xbf16> to vector<80x120xbf16>
    %cst_117 = arith.constant dense<0.000000e+00> : vector<1x120xf32>
    %188 = tpu.matmul %185, %187, %cst_117 {dimension_numbers = #tpu.dot_dimension_numbers<[1], [0], [0], [1], [0, 0, 1, 1], [], []>} : vector<1x80xbf16>, vector<80x120xbf16>, vector<1x120xf32> -> vector<1x120xf32>
    %189 = arith.addf %183, %188 : vector<1x120xf32>
    %c2_118 = arith.constant 2 : index
    %c0_119 = arith.constant 0 : index
    %190 = vector.load %arg14[%c2_118, %c0_119] : memref<5x80xf32, #tpu.memory_space<vmem>>, vector<1x80xf32>
    %191 = arith.truncf %190 : vector<1x80xf32> to vector<1x80xbf16>
    %c2_120 = arith.constant 2 : index
    %c0_121 = arith.constant 0 : index
    %c0_122 = arith.constant 0 : index
    %192 = vector.load %arg6[%c2_120, %c0_121, %c0_122] : memref<5x80x120xbf16, #tpu.memory_space<vmem>>, vector<1x80x120xbf16>
    %193 = vector.shape_cast %192 : vector<1x80x120xbf16> to vector<80x120xbf16>
    %cst_123 = arith.constant dense<0.000000e+00> : vector<1x120xf32>
    %194 = tpu.matmul %191, %193, %cst_123 {dimension_numbers = #tpu.dot_dimension_numbers<[1], [0], [0], [1], [0, 0, 1, 1], [], []>} : vector<1x80xbf16>, vector<80x120xbf16>, vector<1x120xf32> -> vector<1x120xf32>
    %195 = arith.addf %189, %194 : vector<1x120xf32>
    %c3_124 = arith.constant 3 : index
    %c0_125 = arith.constant 0 : index
    %196 = vector.load %arg14[%c3_124, %c0_125] : memref<5x80xf32, #tpu.memory_space<vmem>>, vector<1x80xf32>
    %197 = arith.truncf %196 : vector<1x80xf32> to vector<1x80xbf16>
    %c3_126 = arith.constant 3 : index
    %c0_127 = arith.constant 0 : index
    %c0_128 = arith.constant 0 : index
    %198 = vector.load %arg6[%c3_126, %c0_127, %c0_128] : memref<5x80x120xbf16, #tpu.memory_space<vmem>>, vector<1x80x120xbf16>
    %199 = vector.shape_cast %198 : vector<1x80x120xbf16> to vector<80x120xbf16>
    %cst_129 = arith.constant dense<0.000000e+00> : vector<1x120xf32>
    %200 = tpu.matmul %197, %199, %cst_129 {dimension_numbers = #tpu.dot_dimension_numbers<[1], [0], [0], [1], [0, 0, 1, 1], [], []>} : vector<1x80xbf16>, vector<80x120xbf16>, vector<1x120xf32> -> vector<1x120xf32>
    %201 = arith.addf %195, %200 : vector<1x120xf32>
    %c4_130 = arith.constant 4 : index
    %c0_131 = arith.constant 0 : index
    %202 = vector.load %arg14[%c4_130, %c0_131] : memref<5x80xf32, #tpu.memory_space<vmem>>, vector<1x80xf32>
    %203 = arith.truncf %202 : vector<1x80xf32> to vector<1x80xbf16>
    %c4_132 = arith.constant 4 : index
    %c0_133 = arith.constant 0 : index
    %c0_134 = arith.constant 0 : index
    %204 = vector.load %arg6[%c4_132, %c0_133, %c0_134] : memref<5x80x120xbf16, #tpu.memory_space<vmem>>, vector<1x80x120xbf16>
    %205 = vector.shape_cast %204 : vector<1x80x120xbf16> to vector<80x120xbf16>
    %cst_135 = arith.constant dense<0.000000e+00> : vector<1x120xf32>
    %206 = tpu.matmul %203, %205, %cst_135 {dimension_numbers = #tpu.dot_dimension_numbers<[1], [0], [0], [1], [0, 0, 1, 1], [], []>} : vector<1x80xbf16>, vector<80x120xbf16>, vector<1x120xf32> -> vector<1x120xf32>
    %207 = arith.addf %201, %206 : vector<1x120xf32>
    %c0_136 = arith.constant 0 : index
    %c0_137 = arith.constant 0 : index
    %208 = vector.load %arg7[%c0_136, %c0_137] : memref<1x120xf32, #tpu.memory_space<vmem>>, vector<1x120xf32>
    %209 = arith.addf %207, %208 : vector<1x120xf32>
    %cst_138 = arith.constant 0.000000e+00 : f32
    %210 = vector.broadcast %cst_138 : f32 to vector<1x120xf32>
    %211 = arith.maximumf %209, %210 : vector<1x120xf32>
    %212 = arith.truncf %211 : vector<1x120xf32> to vector<1x120xbf16>
    %c0_139 = arith.constant 0 : index
    %c0_140 = arith.constant 0 : index
    %213 = vector.load %arg8[%c0_139, %c0_140] : memref<120x84xbf16, #tpu.memory_space<vmem>>, vector<120x84xbf16>
    %cst_141 = arith.constant dense<0.000000e+00> : vector<1x84xf32>
    %214 = tpu.matmul %212, %213, %cst_141 {dimension_numbers = #tpu.dot_dimension_numbers<[1], [0], [0], [1], [0, 0, 1, 1], [], []>} : vector<1x120xbf16>, vector<120x84xbf16>, vector<1x84xf32> -> vector<1x84xf32>
    %c0_142 = arith.constant 0 : index
    %c0_143 = arith.constant 0 : index
    %215 = vector.load %arg9[%c0_142, %c0_143] : memref<1x84xf32, #tpu.memory_space<vmem>>, vector<1x84xf32>
    %216 = arith.addf %214, %215 : vector<1x84xf32>
    %cst_144 = arith.constant 0.000000e+00 : f32
    %217 = vector.broadcast %cst_144 : f32 to vector<1x84xf32>
    %218 = arith.maximumf %216, %217 : vector<1x84xf32>
    %219 = arith.truncf %218 : vector<1x84xf32> to vector<1x84xbf16>
    %c0_145 = arith.constant 0 : index
    %c0_146 = arith.constant 0 : index
    %220 = vector.load %arg10[%c0_145, %c0_146] : memref<84x10xbf16, #tpu.memory_space<vmem>>, vector<84x10xbf16>
    %cst_147 = arith.constant dense<0.000000e+00> : vector<1x10xf32>
    %221 = tpu.matmul %219, %220, %cst_147 {dimension_numbers = #tpu.dot_dimension_numbers<[1], [0], [0], [1], [0, 0, 1, 1], [], []>} : vector<1x84xbf16>, vector<84x10xbf16>, vector<1x10xf32> -> vector<1x10xf32>
    %c0_148 = arith.constant 0 : index
    %c0_149 = arith.constant 0 : index
    %222 = vector.load %arg11[%c0_148, %c0_149] : memref<1x10xf32, #tpu.memory_space<vmem>>, vector<1x10xf32>
    %223 = arith.addf %221, %222 : vector<1x10xf32>
    %c0_150 = arith.constant 0 : index
    %c0_151 = arith.constant 0 : index
    %c0_152 = arith.constant 0 : index
    %224 = vector.load %arg12[%c0_150, %c0_151, %c0_152] : memref<1x1x10xf32, #tpu.memory_space<vmem>>, vector<1x1x10xf32>
    %225 = vector.shape_cast %224 : vector<1x1x10xf32> to vector<1x10xf32>
    %226 = vector.shape_cast %223 : vector<1x10xf32> to vector<1x1x10xf32>
    tpu.vector_store %arg12[%c0_150, %c0_151, %c0_152], %226 {strides = array<i32>} : memref<1x1x10xf32, #tpu.memory_space<vmem>>, vector<1x1x10xf32>,
    return
  }
  func.func @transform_0(%arg0: i32) -> (i32, i32, i32) {
    %c0_i32 = arith.constant 0 : i32
    %c0_i32_0 = arith.constant 0 : i32
    %c0_i32_1 = arith.constant 0 : i32
    return %arg0, %c0_i32, %c0_i32_0 : i32, i32, i32
  }
  func.func @transform_1(%arg0: i32) -> (i32, i32, i32) {
    %c0_i32 = arith.constant 0 : i32
    %c0_i32_0 = arith.constant 0 : i32
    %c0_i32_1 = arith.constant 0 : i32
    %c0_i32_2 = arith.constant 0 : i32
    return %c0_i32, %c0_i32_0, %c0_i32_1 : i32, i32, i32
  }
  func.func @transform_2(%arg0: i32) -> (i32, i32) {
    %c0_i32 = arith.constant 0 : i32
    %c0_i32_0 = arith.constant 0 : i32
    %c0_i32_1 = arith.constant 0 : i32
    return %c0_i32, %c0_i32_0 : i32, i32
  }
  func.func @transform_3(%arg0: i32) -> (i32, i32, i32) {
    %c0_i32 = arith.constant 0 : i32
    %c0_i32_0 = arith.constant 0 : i32
    %c0_i32_1 = arith.constant 0 : i32
    %c0_i32_2 = arith.constant 0 : i32
    return %c0_i32, %c0_i32_0, %c0_i32_1 : i32, i32, i32
  }
  func.func @transform_4(%arg0: i32) -> (i32, i32) {
    %c0_i32 = arith.constant 0 : i32
    %c0_i32_0 = arith.constant 0 : i32
    %c0_i32_1 = arith.constant 0 : i32
    return %c0_i32, %c0_i32_0 : i32, i32
  }
  func.func @transform_5(%arg0: i32) -> (i32, i32, i32) {
    %c0_i32 = arith.constant 0 : i32
    %c0_i32_0 = arith.constant 0 : i32
    %c0_i32_1 = arith.constant 0 : i32
    %c0_i32_2 = arith.constant 0 : i32
    return %c0_i32, %c0_i32_0, %c0_i32_1 : i32, i32, i32
  }
  func.func @transform_6(%arg0: i32) -> (i32, i32) {
    %c0_i32 = arith.constant 0 : i32
    %c0_i32_0 = arith.constant 0 : i32
    %c0_i32_1 = arith.constant 0 : i32
    return %c0_i32, %c0_i32_0 : i32, i32
  }
  func.func @transform_7(%arg0: i32) -> (i32, i32) {
    %c0_i32 = arith.constant 0 : i32
    %c0_i32_0 = arith.constant 0 : i32
    %c0_i32_1 = arith.constant 0 : i32
    return %c0_i32, %c0_i32_0 : i32, i32
  }
  func.func @transform_8(%arg0: i32) -> (i32, i32) {
    %c0_i32 = arith.constant 0 : i32
    %c0_i32_0 = arith.constant 0 : i32
    %c0_i32_1 = arith.constant 0 : i32
    return %c0_i32, %c0_i32_0 : i32, i32
  }
  func.func @transform_9(%arg0: i32) -> (i32, i32) {
    %c0_i32 = arith.constant 0 : i32
    %c0_i32_0 = arith.constant 0 : i32
    %c0_i32_1 = arith.constant 0 : i32
    return %c0_i32, %c0_i32_0 : i32, i32
  }
  func.func @transform_10(%arg0: i32) -> (i32, i32) {
    %c0_i32 = arith.constant 0 : i32
    %c0_i32_0 = arith.constant 0 : i32
    %c0_i32_1 = arith.constant 0 : i32
    return %c0_i32, %c0_i32_0 : i32, i32
  }
  func.func @transform_11(%arg0: i32) -> (i32, i32, i32) {
    %c0_i32 = arith.constant 0 : i32
    %c0_i32_0 = arith.constant 0 : i32
    %c0_i32_1 = arith.constant 0 : i32
    return %arg0, %c0_i32, %c0_i32_0 : i32, i32, i32
  }
}

</mosaic_0001>

<bundles_post_ra>
// kernel: net_forward.1
= control target key start
LH: loop header
LB: loop body
LE: loop exit
PB: predicated region body
PF: predicated region fallthrough
CT: control target
= control target key end

     0   :  { %s4994_s0 = inlined_call_operand.vmem [shape: f32[2,32,96], index: 0, kind: input, shape index: {}]   ;;  %s4995_s1 = inlined_call_operand.vmem [shape: bf16[5,96,168], index: 1, kind: input, shape index: {}]   ;;  %s4996_s2 = inlined_call_operand.vmem [shape: f32[1,168], index: 2, kind: input, shape index: {}]   ;;  %s4997_s3 = inlined_call_operand.vmem [shape: bf16[5,84,160], index: 3, kind: input, shape index: {}]   ;;  %s4998_s4 = inlined_call_operand.vmem [shape: f32[1,160], index: 4, kind: input, shape index: {}]   ;;  %s4999_s5 = inlined_call_operand.vmem [shape: bf16[5,80,120], index: 5, kind: input, shape index: {}]   ;;  %s5000_s6 = inlined_call_operand.vmem [shape: f32[1,120], index: 6, kind: input, shape index: {}]   ;;  %s5001_s7 = inlined_call_operand.vmem [shape: bf16[120,84], index: 7, kind: input, shape index: {}]   ;;  %s5002_s8 = inlined_call_operand.vmem [shape: f32[1,84], index: 8, kind: input, shape index: {}]   ;;  %s5003_s9 = inlined_call_operand.vmem [shape: bf16[84,10], index: 9, kind: input, shape index: {}]   ;;  %s5004_s10 = inlined_call_operand.vmem [shape: f32[1,10], index: 10, kind: input, shape index: {}]   ;;  %s5005_s11 = inlined_call_operand.hbm [shape: f32[2,1,10], index: 11, kind: output, shape index: {}]  }
   0x1   :  { %5017 = sst [smem:[#allocation8_spill]] %s4994_s0 }
   0x2   :  { %16 = vsyncpa [#allocation5], 0 }
   0x3   :  { %18 = vsyncpa [#allocation5 + $0x1], 0  ;;  %s3730_s17 = smov 0   ;;  %s3732_s18 = smov 0  }
   0x4   :  { %s3734_s19 = smov 0   ;;  %s3736_s20 = smov 0  }
   0x5 LB: > { %s3751_s21 = sadd.s32 4294967295, %s3666_s20   ;;  %s2558_s22 = sadd.s32 4294967294, %s3666_s20   ;;  %s3666_s20 = sphi %s3736_s20, %s5077_s20   ;;  %s3662_s19 = sphi %s3734_s19, %s5076_s19   ;;  %s3658_s18 = sphi %s3732_s18, %s5075_s18   ;;  %s3654_s17 = sphi %s3730_s17, %s5074_s17  }
   0x6   : > { %s3755_s23 = sadd.s32 1, %s3666_s20   ;;  %s267_s24 = sadd.s32 1, %s3662_s19 }
   0x7   : > { %s264_s25 = ssub.s32 %s3666_s20, %s3755_s23  ;;  %p277_p0 = scmp.ne.s32.totalorder %s3662_s19, %s3658_s18 }
   0x8   : > { %p265_p1 = scmp.eq.s32.totalorder %s264_s25, 0  ;;  %p278_p2 = scmp.eq.s32.totalorder %s3751_s21, 1 }
   0x9   : > { %p283_p3 = scmp.ne.s32.totalorder %s3658_s18, %s3654_s17  ;;  %p284_p4 = scmp.eq.s32.totalorder %s2558_s22, 1 }
   0xa   : > { %s3766_s26 = scalar_select %p265_p1, %s3662_s19, %s267_s24  }
   0xb   : > { %p3768_p5 = por %p278_p2, %p277_p0  ;;  %p3772_p6 = por %p284_p4, %p283_p3 }
   0xc   : > { %5018 = sst [smem:[#allocation7_spill]] %s3766_s26  ;;  %p2561_p7 = scmp.ge.s32.totalorder %s3666_s20, 1 }
   0xd   : > { %p340_p8 = scmp.lt.s32.totalorder %s3666_s20, 3 }
   0xf   : > { %p341_p9 = pnand %p2561_p7, %p340_p8 }
  0x10   : > { %p379_p10 = scmp.lt.s32.totalorder (!%p341_p9), %s3751_s21, 1  ;;  %s5021_s0 = sld [smem:[#allocation8_spill]] (!%p341_p9) }
  0x11   : > { %344 = sbr.rel (%p341_p9) target bundleno = 1507 (0x5e3), region = 64  ;;  %s377_s16 = sand.u32 (!%p341_p9), 1, %s3658_s18  }
  0x12   : > { %s2499_s25 = scalar_lea.hbm (!%p341_p9), %s5005_s11, %s3751_s21  ;;  %s378_s30 = scalar_lea.vmem (!%p341_p9), [#allocation4], %s377_s16 }
  0x13   : > { %s2503_s12 = sshll.u32 (!%p341_p9), %s2499_s25, 4  ;;  %s2491_s13 = scalar_lea.sflag (!%p341_p9), [#allocation5], %s377_s16  ;;  %s2504_s12 = int_to_ptr.hbm [resolvable:$true] %s2503_s12 }
  0x14   : > { %s3618_s14 = sshra.s32 (!%p341_p9), %s2504_s12, 4  ;;  %s3619_s14 = int_to_ptr.hbm [resolvable:$true] %s3618_s14 }
  0x15   : > { %p3625_p0 = scmp.lt.s32.totalorder (!%p341_p9), %s3619_s14, %s5005_s11 }
  0x16   : > { %v2618_v0 = vld [vmem:[%s4995_s1 + $0xb0] sm:$0xf]  ;;  %v3439_v1 = vld [vmem:[%s4995_s1 + $0xb4] sm:$0xf0]  ;;  %v3438_v2 = vld [vmem:[%s4995_s1 + $0xb4] sm:$0xf] }
  0x17   : > { %v2619_v3 = vor.u32 %v3439_v1, %v2618_v0  ;;  %v2620_v4 = vld [vmem:[%s4995_s1 + $0xb8] sm:$0xf0]  ;;  %v2670_v5 = vld [vmem:[%s4995_s1 + $0x50] sm:$0xf]  ;;  %v3427_v6 = vld [vmem:[%s4995_s1 + $0x54] sm:$0xf0] }
  0x18   : > { %v2623_v7 = vor.u32 %v3438_v2, %v2620_v4  ;;  %v2671_v8 = vor.u32 %v3427_v6, %v2670_v5  ;;  %v3426_v9 = vld [vmem:[%s4995_s1 + $0x54] sm:$0xf]  ;;  %v2672_v10 = vld [vmem:[%s4995_s1 + $0x58] sm:$0xf0]  ;;  %v2610_v11 = vld [vmem:[%s4995_s1 + $0xa0] sm:$0xf] }
  0x19   : > { %491 = vmatpush.bf16.msra.mxu0 %v2619_v3  ;;  %v2675_v12 = vor.u32 %v3426_v9, %v2672_v10  ;;  %v3437_v13 = vld [vmem:[%s4995_s1 + $0xa4] sm:$0xf0]  ;;  %v3436_v14 = vld [vmem:[%s4995_s1 + $0xa4] sm:$0xf]  ;;  %v2612_v15 = vld [vmem:[%s4995_s1 + $0xa8] sm:$0xf0] }
  0x1a   : > { %510 = vmatpush.bf16.msra.mxu1 %v2623_v7  ;;  %595 = vmatpush.bf16.msra.mxu2 %v2671_v8  ;;  %v2611_v16 = vor.u32 %v3437_v13, %v2610_v11  ;;  %v2615_v17 = vor.u32 %v3436_v14, %v2612_v15  ;;  %v2662_v18 = vld [vmem:[%s4995_s1 + $0x40] sm:$0xf]  ;;  %v3425_v19 = vld [vmem:[%s4995_s1 + $0x44] sm:$0xf0]  ;;  %v3424_v20 = vld [vmem:[%s4995_s1 + $0x44] sm:$0xf] }
  0x1b   : > { %614 = vmatpush.bf16.msra.mxu3 %v2675_v12  ;;  %v2663_v21 = vor.u32 %v3425_v19, %v2662_v18  ;;  %v2664_v22 = vld [vmem:[%s4995_s1 + $0x48] sm:$0xf0]  ;;  %v2602_v23 = vld [vmem:[%s4995_s1 + $0x90] sm:$0xf]  ;;  %v3435_v24 = vld [vmem:[%s4995_s1 + $0x94] sm:$0xf0] }
  0x1c   : > { %v2667_v25 = vor.u32 %v3424_v20, %v2664_v22  ;;  %v3434_v26 = vld [vmem:[%s4995_s1 + $0x94] sm:$0xf]  ;;  %v2604_v27 = vld [vmem:[%s4995_s1 + $0x98] sm:$0xf0]  ;;  %v2654_v28 = vld [vmem:[%s4995_s1 + $0x30] sm:$0xf]  ;;  %v2603_v29 = vor.u32 %v3435_v24, %v2602_v23 }
  0x1d   : > { %492 = vmatpush.bf16.msra.mxu0 %v2611_v16  ;;  %v3423_v30 = vld [vmem:[%s4995_s1 + $0x34] sm:$0xf0]  ;;  %v3422_v31 = vld [vmem:[%s4995_s1 + $0x34] sm:$0xf]  ;;  %v2656_v32 = vld [vmem:[%s4995_s1 + $0x38] sm:$0xf0]  ;;  %v2607_v33 = vor.u32 %v3434_v26, %v2604_v27 }
  0x1e   : > { %511 = vmatpush.bf16.msra.mxu1 %v2615_v17  ;;  %596 = vmatpush.bf16.msra.mxu2 %v2663_v21  ;;  %v2655_v34 = vor.u32 %v3423_v30, %v2654_v28  ;;  %v2594_v35 = vld [vmem:[%s4995_s1 + $0x80] sm:$0xf]  ;;  %v3433_v36 = vld [vmem:[%s4995_s1 + $0x84] sm:$0xf0]  ;;  %v3432_v37 = vld [vmem:[%s4995_s1 + $0x84] sm:$0xf]  ;;  %v2659_v38 = vor.u32 %v3422_v31, %v2656_v32 }
  0x1f   : > { %615 = vmatpush.bf16.msra.mxu3 %v2667_v25  ;;  %v2596_v39 = vld [vmem:[%s4995_s1 + $0x88] sm:$0xf0]  ;;  %v2646_v40 = vld [vmem:[%s4995_s1 + $0x20] sm:$0xf]  ;;  %v3421_v41 = vld [vmem:[%s4995_s1 + $0x24] sm:$0xf0]  ;;  %v2595_v44 = vor.u32 %v3433_v36, %v2594_v35 }
  0x20   : > { %v3420_v42 = vld [vmem:[%s4995_s1 + $0x24] sm:$0xf]  ;;  %v2648_v43 = vld [vmem:[%s4995_s1 + $0x28] sm:$0xf0]  ;;  %v2599_v45 = vor.u32 %v3432_v37, %v2596_v39  ;;  %v2647_v46 = vor.u32 %v3421_v41, %v2646_v40  ;;  %v2586_v47 = vld [vmem:[%s4995_s1 + $0x70] sm:$0xf] }
  0x21   : > { %493 = vmatpush.bf16.msra.mxu0 %v2603_v29  ;;  %v3431_v48 = vld [vmem:[%s4995_s1 + $0x74] sm:$0xf0]  ;;  %v3430_v49 = vld [vmem:[%s4995_s1 + $0x74] sm:$0xf]  ;;  %v2651_v50 = vor.u32 %v3420_v42, %v2648_v43  ;;  %v2588_v51 = vld [vmem:[%s4995_s1 + $0x78] sm:$0xf0] }
  0x22   : > { %512 = vmatpush.bf16.msra.mxu1 %v2607_v33  ;;  %597 = vmatpush.bf16.msra.mxu2 %v2655_v34  ;;  %v2638_v52 = vld [vmem:[%s4995_s1 + $0x10] sm:$0xf]  ;;  %v3419_v53 = vld [vmem:[%s4995_s1 + $0x14] sm:$0xf0]  ;;  %v3418_v54 = vld [vmem:[%s4995_s1 + $0x14] sm:$0xf]  ;;  %v2587_v56 = vor.u32 %v3431_v48, %v2586_v47  ;;  %v2591_v60 = vor.u32 %v3430_v49, %v2588_v51 }
  0x23   : > { %616 = vmatpush.bf16.msra.mxu3 %v2659_v38  ;;  %v2640_v55 = vld [vmem:[%s4995_s1 + $0x18] sm:$0xf0]  ;;  %v2578_v57 = vld [vmem:[%s4995_s1 + $0x60] sm:$0xf]  ;;  %v3429_v58 = vld [vmem:[%s4995_s1 + $0x64] sm:$0xf0]  ;;  %v2639_v61 = vor.u32 %v3419_v53, %v2638_v52 }
  0x24   : > { %v3428_v59 = vld [vmem:[%s4995_s1 + $0x64] sm:$0xf]  ;;  %v2580_v62 = vld [vmem:[%s4995_s1 + $0x68] sm:$0xf0]  ;;  %v2630_v63 = vld [vmem:[%s4995_s1] sm:$0xf]  ;;  %v2643_v0 = vor.u32 %v3418_v54, %v2640_v55  ;;  %v2579_v6 = vor.u32 %v3429_v58, %v2578_v57 }
  0x25   : > { %494 = vmatpush.bf16.msra.mxu0 %v2595_v44  ;;  %v3417_v1 = vld [vmem:[%s4995_s1 + $0x4] sm:$0xf0]  ;;  %v3416_v2 = vld [vmem:[%s4995_s1 + $0x4] sm:$0xf]  ;;  %v2632_v3 = vld [vmem:[%s4995_s1 + $0x8] sm:$0xf0]  ;;  %v2583_v10 = vor.u32 %v3428_v59, %v2580_v62 }
  0x26   : > { %513 = vmatpush.bf16.msra.mxu1 %v2599_v45  ;;  %598 = vmatpush.bf16.msra.mxu2 %v2647_v46  ;;  %s380_s24 = scalar_select %p379_p10, %s3751_s21, 1  ;;  %v2734_v4 = vld [vmem:[%s4995_s1 + $0x110] sm:$0xf]  ;;  %v3451_v5 = vld [vmem:[%s4995_s1 + $0x114] sm:$0xf0]  ;;  %v2631_v11 = vor.u32 %v3417_v1, %v2630_v63  ;;  %v2635_v14 = vor.u32 %v3416_v2, %v2632_v3  ;;  %vm482_vm0 = vcmask 785408  }
  0x27   : > { %617 = vmatpush.bf16.msra.mxu3 %v2651_v50  ;;  %v3450_v7 = vld [vmem:[%s4995_s1 + $0x114] sm:$0xf]  ;;  %v2736_v8 = vld [vmem:[%s4995_s1 + $0x118] sm:$0xf0]  ;;  %v2798_v9 = vld [vmem:[%s4995_s1 + $0x170] sm:$0xf]  ;;  %v2735_v15 = vor.u32 %v3451_v5, %v2734_v4 }
  0x28   : > { %s3415_s26 = sshll.u32 %s380_s24, 5  ;;  %v3463_v12 = vld [vmem:[%s4995_s1 + $0x174] sm:$0xf0]  ;;  %v3462_v13 = vld [vmem:[%s4995_s1 + $0x174] sm:$0xf]  ;;  %v2739_v22 = vor.u32 %v3450_v7, %v2736_v8  ;;  %vm1073_vm4 = vcmask 1045504  }
  0x29   : > { %495 = vmatpush.bf16.msra.mxu0 %v2587_v56  ;;  %s3948_s15 = scalar_lea.vmem %s5021_s0, %s3415_s26  ;;  %v2800_v16 = vld [vmem:[%s4995_s1 + $0x178] sm:$0xf0]  ;;  %v2726_v17 = vld [vmem:[%s4995_s1 + $0x100] sm:$0xf]  ;;  %v3449_v18 = vld [vmem:[%s4995_s1 + $0x104] sm:$0xf0]  ;;  %v2799_v28 = vor.u32 %v3463_v12, %v2798_v9 }
  0x2a   : > { %514 = vmatpush.bf16.msra.mxu1 %v2591_v60  ;;  %599 = vmatpush.bf16.msra.mxu2 %v2639_v61  ;;  %v403_v19 = vld [vmem:[%s3948_s15 + $0x1] sm:$0xff]  ;;  %v404_v20 = vld [vmem:[%s3948_s15 + $0x9] sm:$0xff]  ;;  %v2803_v29 = vor.u32 %v3462_v13, %v2800_v16  ;;  %v2727_v30 = vor.u32 %v3449_v18, %v2726_v17  ;;  %v3447_v37 = vld [vmem:[%s4995_s1 + $0xf4] sm:$0xf0]  ;;  %vm1069_vm7 = vcmask 228352   ;;  %s2501_s26 = sshll.u32 %s378_s30, 4  ;;  %s2502_s26 = int_to_ptr.vmem [resolvable:$true] %s2501_s26 }
  0x2b   : > { %618 = vmatpush.bf16.msra.mxu3 %v2643_v0  ;;  %v385_v21 = vld [vmem:[%s3948_s15] sm:$0xff]  ;;  %v407_v23 = vpack.c.bf16 %v404_v20, %v403_v19  ;;  %v386_v24 = vld [vmem:[%s3948_s15 + $0x8] sm:$0xff]  ;;  %v2718_v36 = vld [vmem:[%s4995_s1 + $0xf0] sm:$0xf]  ;;  %s3620_s24 = scalar_lea.hbm %s3619_s14, 1  ;;  %s3624_s0 = scalar_lea.hbm %s5005_s11, 2 }
  0x2c   : > { %v3448_v25 = vld [vmem:[%s4995_s1 + $0x104] sm:$0xf]  ;;  %v2728_v26 = vld [vmem:[%s4995_s1 + $0x108] sm:$0xf0]  ;;  %v389_v27 = vpack.c.bf16 %v386_v24, %v385_v21  ;;  %v2790_v31 = vld [vmem:[%s4995_s1 + $0x160] sm:$0xf]  ;;  %v2719_v42 = vor.u32 %v3447_v37, %v2718_v36  ;;  %p3621_p11 = scmp.ne.s32.totalorder %s3619_s14, %s3620_s24  ;;  %p3626_p1 = scmp.lt.s32.totalorder %s3624_s0, %s3620_s24 }
  0x2d   : > { %496 = vmatpush.bf16.msra.mxu0 %v2579_v6  ;;  %v3461_v32 = vld [vmem:[%s4995_s1 + $0x164] sm:$0xf0]  ;;  %v3460_v33 = vld [vmem:[%s4995_s1 + $0x164] sm:$0xf]  ;;  %v2731_v34 = vor.u32 %v3448_v25, %v2728_v26  ;;  %v2792_v35 = vld [vmem:[%s4995_s1 + $0x168] sm:$0xf0] }
  0x2e   : > { %515 = vmatpush.bf16.msra.mxu1 %v2583_v10  ;;  %600 = vmatpush.bf16.msra.mxu2 %v2631_v11  ;;  %v3446_v38 = vld [vmem:[%s4995_s1 + $0xf4] sm:$0xf]  ;;  %v2720_v39 = vld [vmem:[%s4995_s1 + $0xf8] sm:$0xf0]  ;;  %v2791_v40 = vor.u32 %v3461_v32, %v2790_v31  ;;  %v2795_v41 = vor.u32 %v3460_v33, %v2792_v35  ;;  %v2782_v43 = vld [vmem:[%s4995_s1 + $0x150] sm:$0xf]  ;;  %p3622_p12 = pnand %p3621_p11, %p3768_p5  ;;  %p3627_p2 = por %p3626_p1, %p3625_p0 }
  0x2f   : > { %619 = vmatpush.bf16.msra.mxu3 %v2635_v14  ;;  %v3459_v44 = vld [vmem:[%s4995_s1 + $0x154] sm:$0xf0]  ;;  %v3458_v45 = vld [vmem:[%s4995_s1 + $0x154] sm:$0xf]  ;;  %v2723_v46 = vor.u32 %v3446_v38, %v2720_v39  ;;  %v2784_v47 = vld [vmem:[%s4995_s1 + $0x158] sm:$0xf0] }
  0x30   : > { %2624 = vmatmul.msk.bf16.vlgmr.msra.gmra.mxu0 %vm482_vm0, %v407_v23  ;;  %v2710_v48 = vld [vmem:[%s4995_s1 + $0xe0] sm:$0xf]  ;;  %v3445_v49 = vld [vmem:[%s4995_s1 + $0xe4] sm:$0xf0]  ;;  %v3444_v50 = vld [vmem:[%s4995_s1 + $0xe4] sm:$0xf]  ;;  %v2783_v52 = vor.u32 %v3459_v44, %v2782_v43  ;;  %v2787_v54 = vor.u32 %v3458_v45, %v2784_v47  ;;  %p3623_p13 = pneg %p3622_p12 }
  0x31   : > { %718 = vmatpush.bf16.msrb.mxu0 %v2735_v15  ;;  %2626 = vmatmul.msk.bf16.vlgmr.msra.gmra.mxu1 %vm482_vm0, %v407_v23  ;;  %v2712_v51 = vld [vmem:[%s4995_s1 + $0xe8] sm:$0xf0]  ;;  %v405_v53 = vld [vmem:[%s3948_s15 + $0x11] sm:$0xff]  ;;  %v2711_v55 = vor.u32 %v3445_v49, %v2710_v48  ;;  %v2774_v56 = vld [vmem:[%s4995_s1 + $0x140] sm:$0xf] }
  0x32   : > { %737 = vmatpush.bf16.msrb.mxu1 %v2739_v22  ;;  %2676 = vmatmul.msk.bf16.vlgmr.msra.gmra.mxu2 %vm482_vm0, %v389_v27  ;;  %v3457_v57 = vld [vmem:[%s4995_s1 + $0x144] sm:$0xf0]  ;;  %v3456_v58 = vld [vmem:[%s4995_s1 + $0x144] sm:$0xf]  ;;  %v2715_v59 = vor.u32 %v3444_v50, %v2712_v51  ;;  %v2776_v60 = vld [vmem:[%s4995_s1 + $0x148] sm:$0xf0]  ;;  %p3628_p3 = pnand %p3627_p2, %p3623_p13 }
  0x33   : > { %2678 = vmatmul.msk.bf16.vlgmr.msra.gmra.mxu3 %vm482_vm0, %v389_v27  ;;  %849 = vmatpush.bf16.msrb.mxu2 %v2799_v28  ;;  %v2702_v61 = vld [vmem:[%s4995_s1 + $0xd0] sm:$0xf]  ;;  %v3443_v62 = vld [vmem:[%s4995_s1 + $0xd4] sm:$0xf0]  ;;  %v3442_v0 = vld [vmem:[%s4995_s1 + $0xd4] sm:$0xf]  ;;  %v2775_v4 = vor.u32 %v3457_v57, %v2774_v56  ;;  %v2779_v6 = vor.u32 %v3456_v58, %v2776_v60 }
  0x34   : > { %868 = vmatpush.bf16.msrb.mxu3 %v2803_v29  ;;  %v406_v63 = vld [vmem:[%s3948_s15 + $0x19] sm:$0xf]  ;;  %v387_v2 = vld [vmem:[%s3948_s15 + $0x10] sm:$0xff]  ;;  %v2703_v7 = vor.u32 %v3443_v62, %v2702_v61  ;;  %v2694_v13 = vld [vmem:[%s4995_s1 + $0xc0] sm:$0xf] }
  0x35   : > { %719 = vmatpush.bf16.msrb.mxu0 %v2727_v30  ;;  %v2704_v1 = vld [vmem:[%s4995_s1 + $0xd8] sm:$0xf0]  ;;  %v388_v3 = vld [vmem:[%s3948_s15 + $0x18] sm:$0xf]  ;;  %v2766_v5 = vld [vmem:[%s4995_s1 + $0x130] sm:$0xf]  ;;  %v408_v11 = vpack.c.bf16 %v406_v63, %v405_v53 }
  0x36   : > { %738 = vmatpush.bf16.msrb.mxu1 %v2731_v34  ;;  %v3455_v8 = vld [vmem:[%s4995_s1 + $0x134] sm:$0xf0]  ;;  %v3454_v9 = vld [vmem:[%s4995_s1 + $0x134] sm:$0xf]  ;;  %v2768_v10 = vld [vmem:[%s4995_s1 + $0x138] sm:$0xf0]  ;;  %v2707_v12 = vor.u32 %v3442_v0, %v2704_v1  ;;  %v390_v16 = vpack.c.bf16 %v388_v3, %v387_v2 }
  0x37   : > { %850 = vmatpush.bf16.msrb.mxu2 %v2791_v40  ;;  %v3441_v14 = vld [vmem:[%s4995_s1 + $0xc4] sm:$0xf0]  ;;  %v3440_v15 = vld [vmem:[%s4995_s1 + $0xc4] sm:$0xf]  ;;  %v2696_v17 = vld [vmem:[%s4995_s1 + $0xc8] sm:$0xf0]  ;;  %v2767_v20 = vor.u32 %v3455_v8, %v2766_v5  ;;  %v2771_v23 = vor.u32 %v3454_v9, %v2768_v10 }
  0x38   : > { %869 = vmatpush.bf16.msrb.mxu3 %v2795_v41  ;;  %v2862_v18 = vld [vmem:[%s4995_s1 + $0x1d0] sm:$0xf]  ;;  %v3475_v19 = vld [vmem:[%s4995_s1 + $0x1d4] sm:$0xf0]  ;;  %v3474_v21 = vld [vmem:[%s4995_s1 + $0x1d4] sm:$0xf]  ;;  %v2695_v24 = vor.u32 %v3441_v14, %v2694_v13  ;;  %v2699_v27 = vor.u32 %v3440_v15, %v2696_v17 }
  0x39   : > { %720 = vmatpush.bf16.msrb.mxu0 %v2719_v42  ;;  %v2864_v22 = vld [vmem:[%s4995_s1 + $0x1d8] sm:$0xf0]  ;;  %v2758_v25 = vld [vmem:[%s4995_s1 + $0x120] sm:$0xf]  ;;  %v3453_v26 = vld [vmem:[%s4995_s1 + $0x124] sm:$0xf0]  ;;  %v2863_v30 = vor.u32 %v3475_v19, %v2862_v18 }
  0x3a   : > { %739 = vmatpush.bf16.msrb.mxu1 %v2723_v46  ;;  %v3452_v28 = vld [vmem:[%s4995_s1 + $0x124] sm:$0xf]  ;;  %v2760_v29 = vld [vmem:[%s4995_s1 + $0x128] sm:$0xf0]  ;;  %v2867_v31 = vor.u32 %v3474_v21, %v2864_v22  ;;  %v2854_v32 = vld [vmem:[%s4995_s1 + $0x1c0] sm:$0xf]  ;;  %v2759_v34 = vor.u32 %v3453_v26, %v2758_v25 }
  0x3b   : > { %851 = vmatpush.bf16.msrb.mxu2 %v2783_v52  ;;  %v3473_v33 = vld [vmem:[%s4995_s1 + $0x1c4] sm:$0xf0]  ;;  %v3472_v35 = vld [vmem:[%s4995_s1 + $0x1c4] sm:$0xf]  ;;  %v2856_v36 = vld [vmem:[%s4995_s1 + $0x1c8] sm:$0xf0]  ;;  %v2763_v37 = vor.u32 %v3452_v28, %v2760_v29 }
  0x3c   : > { %870 = vmatpush.bf16.msrb.mxu3 %v2787_v54  ;;  %v2855_v38 = vor.u32 %v3473_v33, %v2854_v32  ;;  %v2859_v39 = vor.u32 %v3472_v35, %v2856_v36  ;;  %v2846_v40 = vld [vmem:[%s4995_s1 + $0x1b0] sm:$0xf]  ;;  %v3471_v41 = vld [vmem:[%s4995_s1 + $0x1b4] sm:$0xf0]  ;;  %v3470_v42 = vld [vmem:[%s4995_s1 + $0x1b4] sm:$0xf] }
  0x3d   : > { %721 = vmatpush.bf16.msrb.mxu0 %v2711_v55  ;;  %v2848_v43 = vld [vmem:[%s4995_s1 + $0x1b8] sm:$0xf0]  ;;  %v2847_v44 = vor.u32 %v3471_v41, %v2846_v40  ;;  %v631_v45 = vld [vmem:[%s3948_s15 + $0x2] sm:$0xff]  ;;  %v632_v46 = vld [vmem:[%s3948_s15 + $0xa] sm:$0xff] }
  0x3e   : > { %740 = vmatpush.bf16.msrb.mxu1 %v2715_v59  ;;  %v2851_v47 = vor.u32 %v3470_v42, %v2848_v43  ;;  %v762_v48 = vld [vmem:[%s3948_s15 + $0x3] sm:$0xff]  ;;  %v763_v49 = vld [vmem:[%s3948_s15 + $0xb] sm:$0xff]  ;;  %v635_v52 = vpack.c.bf16 %v632_v46, %v631_v45  ;;  %v3467_v59 = vld [vmem:[%s4995_s1 + $0x194] sm:$0xf0] }
  0x3f   : > { %852 = vmatpush.bf16.msrb.mxu2 %v2775_v4  ;;  %v2838_v50 = vld [vmem:[%s4995_s1 + $0x1a0] sm:$0xf]  ;;  %v3469_v51 = vld [vmem:[%s4995_s1 + $0x1a4] sm:$0xf0]  ;;  %v3468_v53 = vld [vmem:[%s4995_s1 + $0x1a4] sm:$0xf]  ;;  %v766_v55 = vpack.c.bf16 %v763_v49, %v762_v48 }
  0x40   : > { %871 = vmatpush.bf16.msrb.mxu3 %v2779_v6  ;;  %2625 = vmatmul.msk.bf16.gmra.mxu0 %vm482_vm0, %v408_v11  ;;  %v2840_v54 = vld [vmem:[%s4995_s1 + $0x1a8] sm:$0xf0]  ;;  %v2839_v56 = vor.u32 %v3469_v51, %v2838_v50  ;;  %v2830_v58 = vld [vmem:[%s4995_s1 + $0x190] sm:$0xf]  ;;  %v3466_v60 = vld [vmem:[%s4995_s1 + $0x194] sm:$0xf] }
  0x41   : > { %722 = vmatpush.bf16.msrb.mxu0 %v2703_v7  ;;  %2627 = vmatmul.msk.bf16.gmra.mxu1 %vm482_vm0, %v408_v11  ;;  %v2843_v57 = vor.u32 %v3468_v53, %v2840_v54  ;;  %v2832_v61 = vld [vmem:[%s4995_s1 + $0x198] sm:$0xf0]  ;;  %v2831_v62 = vor.u32 %v3467_v59, %v2830_v58  ;;  %v2822_v0 = vld [vmem:[%s4995_s1 + $0x180] sm:$0xf]  ;;  %v3465_v1 = vld [vmem:[%s4995_s1 + $0x184] sm:$0xf0]  ;;  %v1050_v53 = vlaneseq }
  0x42   : > { %741 = vmatpush.bf16.msrb.mxu1 %v2707_v12  ;;  %2677 = vmatmul.msk.bf16.gmra.mxu2 %vm482_vm0, %v390_v16  ;;  %v2835_v63 = vor.u32 %v3466_v60, %v2832_v61  ;;  %v3464_v2 = vld [vmem:[%s4995_s1 + $0x184] sm:$0xf]  ;;  %v2824_v3 = vld [vmem:[%s4995_s1 + $0x188] sm:$0xf0]  ;;  %v2823_v4 = vor.u32 %v3465_v1, %v2822_v0  ;;  %v633_v6 = vld [vmem:[%s3948_s15 + $0x12] sm:$0xff] }
  0x43   : > { %2679 = vmatmul.msk.bf16.gmra.mxu3 %vm482_vm0, %v390_v16  ;;  %853 = vmatpush.bf16.msrb.mxu2 %v2767_v20  ;;  %v2827_v5 = vor.u32 %v3464_v2, %v2824_v3  ;;  %v634_v7 = vld [vmem:[%s3948_s15 + $0x1a] sm:$0xf]  ;;  %v893_v12 = vld [vmem:[%s3948_s15 + $0x4] sm:$0xff]  ;;  %v894_v13 = vld [vmem:[%s3948_s15 + $0xc] sm:$0xff] }
  0x44   : > { %872 = vmatpush.bf16.msrb.mxu3 %v2771_v23  ;;  %v764_v8 = vld [vmem:[%s3948_s15 + $0x13] sm:$0xff]  ;;  %v765_v9 = vld [vmem:[%s3948_s15 + $0x1b] sm:$0xf]  ;;  %v636_v10 = vpack.c.bf16 %v634_v7, %v633_v6  ;;  %v897_v14 = vpack.c.bf16 %v894_v13, %v893_v12  ;;  %v1024_v60 = vld [vmem:[%s4996_s2] sm:$0x3] }
  0x45   : > { %723 = vmatpush.bf16.msrb.mxu0 %v2695_v24  ;;  %v767_v11 = vpack.c.bf16 %v765_v9, %v764_v8  ;;  %v895_v15 = vld [vmem:[%s3948_s15 + $0x14] sm:$0xff]  ;;  %v896_v16 = vld [vmem:[%s3948_s15 + $0x1c] sm:$0xf]  ;;  %v1026_v9 = vperm.slane %v1024_v60, 0 }
  0x46   : > { %742 = vmatpush.bf16.msrb.mxu1 %v2699_v27  ;;  %v898_v17 = vpack.c.bf16 %v896_v16, %v895_v15 }
  0x47   : > { %854 = vmatpush.bf16.msrb.mxu2 %v2759_v34 }
  0x48   : > { %873 = vmatpush.bf16.msrb.mxu3 %v2763_v37 }
  0x49   : > { %980 = vmatpush.bf16.msra.mxu0 %v2863_v30 }
  0x4a   : > { %999 = vmatpush.bf16.msra.mxu1 %v2867_v31 }
  0x4d   : > { %981 = vmatpush.bf16.msra.mxu0 %v2855_v38 }
  0x4e   : > { %1000 = vmatpush.bf16.msra.mxu1 %v2859_v39 }
  0x50   : > { %2740 = vmatmul.msk.bf16.vlgmr.msrb.gmra.mxu0 %vm482_vm0, %v635_v52 }
  0x51   : > { %982 = vmatpush.bf16.msra.mxu0 %v2847_v44  ;;  %2742 = vmatmul.msk.bf16.vlgmr.msrb.gmra.mxu1 %vm482_vm0, %v635_v52 }
  0x52   : > { %1001 = vmatpush.bf16.msra.mxu1 %v2851_v47  ;;  %2804 = vmatmul.msk.bf16.vlgmr.msrb.gmra.mxu2 %vm482_vm0, %v766_v55 }
  0x53   : > { %2806 = vmatmul.msk.bf16.vlgmr.msrb.gmra.mxu3 %vm482_vm0, %v766_v55 }
  0x55   : > { %983 = vmatpush.bf16.msra.mxu0 %v2839_v56 }
  0x56   : > { %1002 = vmatpush.bf16.msra.mxu1 %v2843_v57 }
  0x59   : > { %984 = vmatpush.bf16.msra.mxu0 %v2831_v62 }
  0x5a   : > { %1003 = vmatpush.bf16.msra.mxu1 %v2835_v63 }
  0x5d   : > { %985 = vmatpush.bf16.msra.mxu0 %v2823_v4 }
  0x5e   : > { %1004 = vmatpush.bf16.msra.mxu1 %v2827_v5  ;;  %v4188_v5 = vshrl.u32 %v1050_v53, 7 }
  0x60   : > { %2741 = vmatmul.msk.bf16.gmra.mxu0 %vm482_vm0, %v636_v10 }
  0x61   : > { %2743 = vmatmul.msk.bf16.gmra.mxu1 %vm482_vm0, %v636_v10  ;;  %v1027_v10 = vperm.slane %v1024_v60, 1 }
  0x62   : > { %2805 = vmatmul.msk.bf16.gmra.mxu2 %vm482_vm0, %v767_v11 }
  0x63   : > { %2807 = vmatmul.msk.bf16.gmra.mxu3 %vm482_vm0, %v767_v11 }
  0x70   : > { %2868 = vmatmul.msk.bf16.vlgmr.msra.gmra.mxu0 %vm482_vm0, %v897_v14 }
  0x71   : > { %2870 = vmatmul.msk.bf16.vlgmr.msra.gmra.mxu1 %vm482_vm0, %v897_v14 }
  0x80   : > { %2869 = vmatmul.msk.bf16.gmra.mxu0 %vm482_vm0, %v898_v17 }
  0x81   : > { %2871 = vmatmul.msk.bf16.gmra.mxu1 %vm482_vm0, %v898_v17 }
  0xad   : > { %v498_v18 = vpop.f32.mrf.mxu0 }
  0xae   : > { %v517_v19 = vpop.f32.mrf.mxu1 }
  0xb5   : > { %v500_v20 = vpop.f32.mrf.mxu0  ;;  %v602_v22 = vpop.f32.mrf.mxu2 }
  0xb6   : > { %v519_v21 = vpop.f32.mrf.mxu1  ;;  %v621_v23 = vpop.f32.mrf.mxu3  ;;  %v603_v56 = vadd.f32 %v602_v22, %v498_v18  ;;  %v4191_v22 = vadd.s32 8, %v4188_v5 }
  0xb7   : > { %v622_v57 = vadd.f32 %v621_v23, %v517_v19  ;;  %v4193_v23 = vand.u32 127, %v1050_v53 }
  0xbd   : > { %v503_v24 = vpop.f32.mrf.mxu0  ;;  %v604_v26 = vpop.f32.mrf.mxu2 }
  0xbe   : > { %v522_v25 = vpop.f32.mrf.mxu1  ;;  %v623_v28 = vpop.f32.mrf.mxu3  ;;  %v605_v58 = vadd.f32 %v604_v26, %v500_v20 }
  0xbf   : > { %v624_v62 = vadd.f32 %v623_v28, %v519_v21 }
  0xc5   : > { %v505_v27 = vpop.f32.mrf.mxu0  ;;  %v607_v32 = vpop.f32.mrf.mxu2 }
  0xc6   : > { %v524_v29 = vpop.f32.mrf.mxu1  ;;  %v626_v33 = vpop.f32.mrf.mxu3  ;;  %v608_v52 = vadd.f32 %v607_v32, %v503_v24 }
  0xc7   : > { %v627_v54 = vadd.f32 %v626_v33, %v522_v25  ;;  %v4196_v33 = vmul.u32 2, %v4193_v23 }
  0xcd   : > { %v725_v30 = vpop.f32.mrf.mxu0  ;;  %v609_v36 = vpop.f32.mrf.mxu2 }
  0xce   : > { %v744_v31 = vpop.f32.mrf.mxu1  ;;  %v628_v37 = vpop.f32.mrf.mxu3  ;;  %v610_v63 = vadd.f32 %v609_v36, %v505_v27  ;;  %v754_v2 = vadd.f32 %v725_v30, %v603_v56  ;;  %v1157_v36 = vadd.s32 112, %v4188_v5 }
  0xcf   : > { %v629_v0 = vadd.f32 %v628_v37, %v524_v29  ;;  %v755_v3 = vadd.f32 %v744_v31, %v622_v57  ;;  %v1158_v37 = vadd.s32 120, %v4188_v5 }
  0xd0   : > { %vm1179_vm1 = vcmp.eq.s32.totalorder %v1157_v36, %v4196_v33 }
  0xd1   : > { %vm1180_vm2 = vcmp.eq.s32.totalorder %v1158_v37, %v4196_v33 }
  0xd2   : > { %vm4204_vm3 = vmpackc.low %vm1180_vm2, %vm1179_vm1 }
  0xd5   : > { %v727_v34 = vpop.f32.mrf.mxu0  ;;  %v856_v40 = vpop.f32.mrf.mxu2 }
  0xd6   : > { %v746_v35 = vpop.f32.mrf.mxu1  ;;  %v875_v41 = vpop.f32.mrf.mxu3  ;;  %v756_v6 = vadd.f32 %v727_v34, %v605_v58  ;;  %v885_v11 = vadd.f32 %v856_v40, %v754_v2  ;;  %v1056_v40 = vmul.u32 2, %v4191_v22 }
  0xd7   : > { %v757_v12 = vadd.f32 %v746_v35, %v624_v62  ;;  %v886_v16 = vadd.f32 %v875_v41, %v755_v3  ;;  %v4218_v62 = vadd.s32 1, %v4196_v33  ;;  %v5024_v3 = vmov 0 }
  0xd8   : > { %vm1058_vm6 = vcmp.eq.s32.totalorder %v4193_v23, %v1056_v40 }
  0xd9   : > { %vm1233_vm8 = vcmp.eq.s32.totalorder %v1157_v36, %v4218_v62  ;;  %vm1234_vm9 = vcmp.eq.s32.totalorder %v1158_v37, %v4218_v62 }
  0xda   : > { %vm4224_vm10 = vmpackc.low %vm1234_vm9, %vm1233_vm8 }
  0xdb   : > { %v5025_v3 = vsel %vm4224_vm10, 4294967295, %v5024_v3 }
  0xdd   : > { %v730_v38 = vpop.f32.mrf.mxu0  ;;  %v858_v44 = vpop.f32.mrf.mxu2 }
  0xde   : > { %v749_v39 = vpop.f32.mrf.mxu1  ;;  %v877_v46 = vpop.f32.mrf.mxu3  ;;  %v758_v59 = vadd.f32 %v730_v38, %v608_v52  ;;  %v887_v17 = vadd.f32 %v858_v44, %v756_v6  ;;  %v1063_v6 = vadd.s32 1, %v1056_v40  ;;  %v1146_v40 = vadd.s32 24, %v4188_v5 }
  0xdf   : > { %v759_v1 = vadd.f32 %v749_v39, %v627_v54  ;;  %v888_v20 = vadd.f32 %v877_v46, %v757_v12  ;;  %v1055_v39 = vmul.u32 2, %v4188_v5  ;;  %v1153_v12 = vadd.s32 80, %v4188_v5 }
  0xe0   : > { %vm1065_vm12 = vcmp.eq.s32.totalorder %v4193_v23, %v1063_v6 }
  0xe1   : > { %vm1057_vm5 = vcmp.eq.s32.totalorder %v4193_v23, %v1055_v39  ;;  %vm1175_vm2 = vcmp.eq.s32.totalorder %v1153_v12, %v4196_v33 }
  0xe5   : > { %v732_v42 = vpop.f32.mrf.mxu0  ;;  %v861_v50 = vpop.f32.mrf.mxu2 }
  0xe6   : > { %v751_v43 = vpop.f32.mrf.mxu1  ;;  %v880_v51 = vpop.f32.mrf.mxu3  ;;  %v889_v4 = vadd.f32 %v861_v50, %v758_v59  ;;  %v760_v13 = vadd.f32 %v732_v42, %v610_v63  ;;  %v3669_v59 = vmov 0.0  }
  0xe7   : > { %v890_v7 = vadd.f32 %v880_v51, %v759_v1  ;;  %v761_v18 = vadd.f32 %v751_v43, %v629_v0  ;;  %v3668_v51 = vmov 1.0|1.0   ;;  %v4214_v60 = vsel %vm1057_vm5, 1.0, %v3669_v59 }
  0xe8   : > { %2877 = vmatpush.bf16.msk.msrb.mxu0 %vm4204_vm3, %v3668_v51  ;;  %vm1229_vm5 = vcmp.eq.s32.totalorder %v1153_v12, %v4218_v62 }
  0xed   : > { %v987_v45 = vpop.f32.mrf.mxu0  ;;  %v863_v8 = vpop.f32.mrf.mxu2 }
  0xee   : > { %v1006_v47 = vpop.f32.mrf.mxu1  ;;  %v882_v14 = vpop.f32.mrf.mxu3  ;;  %v891_v21 = vadd.f32 %v863_v8, %v760_v13  ;;  %v1016_v25 = vadd.f32 %v987_v45, %v885_v11  ;;  %v1067_v8 = vsel %vm1065_vm12, 1.0, %v3669_v59  ;;  %v1156_v11 = vadd.s32 104, %v4188_v5 }
  0xef   : > { %v892_v24 = vadd.f32 %v882_v14, %v761_v18  ;;  %v1017_v26 = vadd.f32 %v1006_v47, %v886_v16  ;;  %v1154_v13 = vadd.s32 88, %v4188_v5  ;;  %v1151_v18 = vadd.s32 64, %v4188_v5 }
  0xf0   : > { %v1030_v43 = vadd.f32 %v1026_v9, %v1016_v25  ;;  %vm1178_vm14 = vcmp.eq.s32.totalorder %v1156_v11, %v4196_v33  ;;  %vm1232_vm0 = vcmp.eq.s32.totalorder %v1156_v11, %v4218_v62 }
  0xf5   : > { %v989_v48 = vpop.f32.mrf.mxu0 }
  0xf6   : > { %v1008_v49 = vpop.f32.mrf.mxu1  ;;  %v1018_v27 = vadd.f32 %v989_v48, %v887_v17  ;;  %v1031_v48 = vadd.f32 %v1027_v10, %v1017_v26  ;;  %v5032_v17 = vmov 0  ;;  %v1163_v26 = vadd.s32 160, %v4188_v5 }
  0xf7   : > { %v1019_v29 = vadd.f32 %v1008_v49, %v888_v20  ;;  %v1149_v20 = vadd.s32 48, %v4188_v5 }
  0xf8   : > { %v1032_v41 = vadd.f32 %v1026_v9, %v1018_v27  ;;  %v1039_v63 = vmax.f32 %v1031_v48, 0.0  ;;  %v5040_v27 = vmov 0  ;;  %v5050_v48 = vmov 0 }
  0xf9   : > { %v1033_v44 = vadd.f32 %v1027_v10, %v1019_v29  ;;  %v1148_v29 = vadd.s32 40, %v4188_v5 }
  0xfa   : > { %v1040_v53 = vmax.f32 %v1032_v41, 0.0  ;;  %v1161_v41 = vadd.s32 144, %v4188_v5 }
  0xfb   : > { %v1041_v56 = vmax.f32 %v1033_v44, 0.0  ;;  %v5048_v44 = vmov 0 }
  0xfd   : > { %v992_v55 = vpop.f32.mrf.mxu0  ;;  %v1047_v1 = vpack.c.bf16 %v1041_v56, %v1039_v63 }
  0xfe   : > { %v1011_v61 = vpop.f32.mrf.mxu1  ;;  %v1020_v15 = vadd.f32 %v992_v55, %v889_v4  ;;  %v1038_v55 = vmax.f32 %v1030_v43, 0.0  ;;  %v1062_v4 = vadd.s32 1, %v1055_v39  ;;  %v5044_v39 = vmov 0 }
  0xff   : > { %v1021_v19 = vadd.f32 %v1011_v61, %v890_v7  ;;  %v1060_v61 = vsel %vm1058_vm6, 1.0, %v3669_v59  ;;  %vm1230_vm6 = vcmp.eq.s32.totalorder %v1154_v13, %v4218_v62  ;;  %v5046_v43 = vmov 0 }
 0x100   : > { %v1034_v30 = vadd.f32 %v1026_v9, %v1020_v15  ;;  %v1046_v0 = vpack.c.bf16 %v1040_v53, %v1038_v55  ;;  %v1061_v2 = vpack.c.bf16 %v1060_v61, %v4214_v60  ;;  %vm1064_vm11 = vcmp.eq.s32.totalorder %v4193_v23, %v1062_v4  ;;  %vm4271_vm9 = vmpackc.low %vm1230_vm6, %vm1229_vm5 }
 0x101   : > { %v1035_v34 = vadd.f32 %v1027_v10, %v1021_v19  ;;  %v4235_v7 = vsel %vm1064_vm11, 1.0, %v3669_v59  ;;  %v5028_v15 = vmov 0  ;;  %v5033_v17 = vsel %vm4271_vm9, 4294967295, %v5032_v17 }
 0x102   : > { %v1042_v45 = vmax.f32 %v1034_v30, 0.0  ;;  %v1152_v19 = vadd.s32 72, %v4188_v5  ;;  %vm1173_vm11 = vcmp.eq.s32.totalorder %v1151_v18, %v4196_v33 }
 0x103   : > { %v1043_v49 = vmax.f32 %v1035_v34, 0.0 }
 0x104   : > { %vm1174_vm12 = vcmp.eq.s32.totalorder %v1152_v19, %v4196_v33 }
 0x105   : > { %v994_v28 = vpop.f32.mrf.mxu0 }
 0x106   : > { %v1022_v31 = vadd.f32 %v994_v28, %v891_v21  ;;  %v1013_v32 = vpop.f32.mrf.mxu1  ;;  %v1150_v21 = vadd.s32 56, %v4188_v5  ;;  %v1147_v28 = vadd.s32 32, %v4188_v5 }
 0x107   : > { %v1023_v35 = vadd.f32 %v1013_v32, %v892_v24  ;;  %v5036_v24 = vmov 0 }
 0x108   : > { %v1036_v38 = vadd.f32 %v1026_v9, %v1022_v31  ;;  %v1068_v9 = vpack.c.bf16 %v1067_v8, %v4235_v7  ;;  %vm1226_vm5 = vcmp.eq.s32.totalorder %v1150_v21, %v4218_v62 }
 0x109   : > { %v1037_v42 = vadd.f32 %v1027_v10, %v1023_v35  ;;  %v1155_v10 = vadd.s32 96, %v4188_v5  ;;  %v5042_v35 = vmov 0 }
 0x10a   : > { %v1044_v46 = vmax.f32 %v1036_v38, 0.0  ;;  %v1145_v38 = vadd.s32 16, %v4188_v5 }
 0x10b   : > { %v1045_v50 = vmax.f32 %v1037_v42, 0.0  ;;  %vm1177_vm13 = vcmp.eq.s32.totalorder %v1155_v10, %v4196_v33  ;;  %vm1231_vm15 = vcmp.eq.s32.totalorder %v1155_v10, %v4218_v62  ;;  %v1162_v42 = vadd.s32 152, %v4188_v5 }
 0x10c   : > { %v1048_v52 = vpack.c.bf16 %v1044_v46, %v1042_v45  ;;  %vm4249_vm1 = vmpackc.low %vm1178_vm14, %vm1177_vm13  ;;  %vm1227_vm13 = vcmp.eq.s32.totalorder %v1151_v18, %v4218_v62  ;;  %vm1228_vm14 = vcmp.eq.s32.totalorder %v1152_v19, %v4218_v62  ;;  %v1159_v45 = vadd.s32 128, %v4188_v5 }
 0x10d   : > { %v1049_v54 = vpack.c.bf16 %v1045_v50, %v1043_v49  ;;  %2879 = vmatpush.bf16.msk.msrb.mxu0 %vm4249_vm1, %v3668_v51  ;;  %vm4300_vm6 = vmpackc.low %vm1228_vm14, %vm1227_vm13  ;;  %vm1239_vm13 = vcmp.eq.s32.totalorder %v1163_v26, %v4218_v62  ;;  %vm1169_vm14 = vcmp.eq.s32.totalorder %v1147_v28, %v4196_v33  ;;  %v1160_v46 = vadd.s32 136, %v4188_v5 }
 0x10e   : > { %v1075_v57 = vsel %vm1073_vm4, %v1048_v52, 0  ;;  %v5037_v24 = vsel %vm4300_vm6, 4294967295, %v5036_v24  ;;  %v1260_v31 = vsel %vm1239_vm13, 1.0, %v3669_v59  ;;  %v2928_v52 = vld [vmem:[%s4997_s3 + $0xa8] sm:$0x33] }
 0x10f   : > { %1086 = vmatpush.bf16.msra.mxu2 %v1075_v57  ;;  %v1078_v58 = vsel %vm1073_vm4, %v1049_v54, 0  ;;  %vm1176_vm4 = vcmp.eq.s32.totalorder %v1154_v13, %v4196_v33  ;;  %v1271_v34 = vpack.c.bf16 %v1260_v31, %v1260_v31  ;;  %v1405_v53 = vunpack.c.l.b16 %v2928_v52  ;;  %v1358_v13 = vld [vmem:[%s4997_s3 + $0x50] sm:$0x33] }
 0x110   : > { %1100 = vmatpush.bf16.msra.mxu3 %v1078_v58  ;;  %vm4267_vm8 = vmpackc.low %vm1176_vm4, %vm1175_vm2  ;;  %vm1172_vm2 = vcmp.eq.s32.totalorder %v1150_v21, %v4196_v33  ;;  %vm1225_vm4 = vcmp.eq.s32.totalorder %v1149_v20, %v4218_v62  ;;  %v1406_v54 = vunpack.c.h.b16 %v2928_v52  ;;  %v1498_v18 = vunpack.c.l.b16 %v1358_v13  ;;  %v3495_v21 = vld [vmem:[%s4997_s3 + $0x9c] sm:$0xf0]  ;;  %v3485_v52 = vld [vmem:[%s4997_s3 + $0x44] sm:$0xf0] }
 0x111   : > { %2881 = vmatpush.bf16.msk.msrb.mxu0 %vm4267_vm8, %v3668_v51  ;;  %v1499_v19 = vunpack.c.h.b16 %v1358_v13  ;;  %v2941_v13 = vld [vmem:[%s4997_s3 + $0x70] sm:$0xf0] }
 0x113   : > { %1087 = vmatpush.bf16.msra.mxu2 %v1046_v0  ;;  %v1511_v31 = vpack.c.b16 %v1499_v19, %v1499_v19  ;;  %v3481_v19 = vld [vmem:[%s4997_s3 + $0x24] sm:$0xf0] }
 0x114   : > { %1101 = vmatpush.bf16.msra.mxu3 %v1047_v1 }
 0x116   : > { %2872 = vmatmul.msk.bf16.vlgmr.msra.gmra.mxu2 %vm1069_vm7, %v1061_v2 }
 0x117   : > { %1117 = vmatpush.bf16.msrb.mxu2 %v1075_v57  ;;  %2873 = vmatmul.msk.bf16.vlgmr.msra.gmra.mxu3 %vm1069_vm7, %v1061_v2  ;;  %v1417_v57 = vpack.c.b16 %v1405_v53, %v1405_v53  ;;  %v3484_v53 = vld [vmem:[%s4997_s3 + $0x44] sm:$0xf] }
 0x118   : > { %1131 = vmatpush.bf16.msrb.mxu3 %v1078_v58  ;;  %v1418_v58 = vpack.c.b16 %v1406_v54, %v1406_v54  ;;  %v3007_v54 = vld [vmem:[%s4997_s3 + $0x48] sm:$0xf0] }
 0x11b   : > { %1118 = vmatpush.bf16.msrb.mxu2 %v1046_v0 }
 0x11c   : > { %1132 = vmatpush.bf16.msrb.mxu3 %v1047_v1 }
 0x11f   : > { %2898 = vmatpush.bf16.msk.msra.mxu2 %vm4224_vm10, %v3668_v51 }
 0x126   : > { %2874 = vmatmul.msk.bf16.vlgmr.msrb.gmra.mxu2 %vm1069_vm7, %v1068_v9 }
 0x127   : > { %2875 = vmatmul.msk.bf16.vlgmr.msrb.gmra.mxu3 %vm1069_vm7, %v1068_v9  ;;  %vm4260_vm7 = vmpackc.low %vm1232_vm0, %vm1231_vm15  ;;  %vm1171_vm0 = vcmp.eq.s32.totalorder %v1149_v20, %v4196_v33  ;;  %v2963_v20 = vld [vmem:[%s4997_s3 + $0x98] sm:$0xf] }
 0x128   : > { %v5029_v15 = vsel %vm4260_vm7, 4294967295, %v5028_v15  ;;  %2900 = vmatpush.bf16.msk.msra.mxu2 %vm4260_vm7, %v3668_v51  ;;  %vm4289_vm15 = vmpackc.low %vm1174_vm12, %vm1173_vm11  ;;  %vm1237_vm7 = vcmp.eq.s32.totalorder %v1161_v41, %v4218_v62 }
 0x129   : > { %2883 = vmatpush.bf16.msk.msrb.mxu0 %vm4289_vm15, %v3668_v51  ;;  %vm4307_vm11 = vmpackc.low %vm1172_vm2, %vm1171_vm0  ;;  %vm1170_vm0 = vcmp.eq.s32.totalorder %v1148_v29, %v4196_v33  ;;  %vm5007_vm2 = vcmask 1043456  }
 0x12a   : > { %vm4312_vm12 = vmpackc.low %vm1226_vm5, %vm1225_vm4  ;;  %vm1223_vm4 = vcmp.eq.s32.totalorder %v1147_v28, %v4218_v62  ;;  %v1309_v37 = vsel %vm5007_vm2, %v1271_v34, 0  ;;  %v2964_v28 = vor.u32 %v3495_v21, %v2963_v20 }
 0x12b   : > { %v5041_v27 = vsel %vm4312_vm12, 4294967295, %v5040_v27  ;;  %vm4331_vm5 = vmpackc.low %vm1170_vm0, %vm1169_vm14  ;;  %1330 = vmatpush.bf16.msra.mxu3 %v1309_v37  ;;  %vm1167_vm14 = vcmp.eq.s32.totalorder %v1145_v38, %v4196_v33  ;;  %vm1221_vm0 = vcmp.eq.s32.totalorder %v1145_v38, %v4218_v62  ;;  %v2955_v37 = vld [vmem:[%s4997_s3 + $0x88] sm:$0xf]  ;;  %v3493_v38 = vld [vmem:[%s4997_s3 + $0x8c] sm:$0xf0] }
 0x12c   : > { %2902 = vmatpush.bf16.msk.msra.mxu2 %vm4271_vm9, %v3668_v51  ;;  %vm1185_vm9 = vcmp.eq.s32.totalorder %v1163_v26, %v4196_v33  ;;  %v5043_v35 = vsel %vm4331_vm5, 4294967295, %v5042_v35  ;;  %v3494_v26 = vld [vmem:[%s4997_s3 + $0x9c] sm:$0xf] }
 0x12d   : > { %2885 = vmatpush.bf16.msk.msrb.mxu0 %vm4307_vm11, %v3668_v51  ;;  %v1206_v30 = vsel %vm1185_vm9, 1.0, %v3669_v59  ;;  %vm1224_vm9 = vcmp.eq.s32.totalorder %v1148_v29, %v4218_v62  ;;  %v2965_v29 = vld [vmem:[%s4997_s3 + $0xa0] sm:$0xf0] }
 0x12e   : > { %v1217_v32 = vpack.c.bf16 %v1206_v30, %v1206_v30  ;;  %vm4342_vm13 = vmpackc.low %vm1224_vm9, %vm1223_vm4  ;;  %vm1168_vm4 = vcmp.eq.s32.totalorder %v1146_v40, %v4196_v33  ;;  %vm1183_vm9 = vcmp.eq.s32.totalorder %v1161_v41, %v4196_v33  ;;  %v1510_v30 = vpack.c.b16 %v1498_v18, %v1498_v18  ;;  %v3492_v41 = vld [vmem:[%s4997_s3 + $0x8c] sm:$0xf]  ;;  %v2989_v18 = vld [vmem:[%s4997_s3 + $0x20] sm:$0xf] }
 0x12f   : > { %v5045_v39 = vsel %vm4342_vm13, 4294967295, %v5044_v39  ;;  %v2990_v21 = vor.u32 %v3481_v19, %v2989_v18  ;;  %v3060_v18 = vld [vmem:[%s4997_s3 + $0xf8] sm:$0xf0]  ;;  %v3050_v19 = vld [vmem:[%s4997_s3 + $0xe0] sm:$0xf] }
 0x130   : > { %2904 = vmatpush.bf16.msk.msra.mxu2 %vm4300_vm6, %v3668_v51  ;;  %v1278_v36 = vsel %vm5007_vm2, %v1217_v32, 0  ;;  %vm1184_vm2 = vcmp.eq.s32.totalorder %v1162_v42, %v4196_v33  ;;  %vm4358_vm6 = vmpackc.low %vm1168_vm4, %vm1167_vm14  ;;  %vm1165_vm4 = vcmp.eq.s32.totalorder %v4188_v5, %v4196_v33  ;;  %v2968_v32 = vor.u32 %v3494_v26, %v2965_v29  ;;  %v3480_v26 = vld [vmem:[%s4997_s3 + $0x24] sm:$0xf] }
 0x131   : > { %2887 = vmatpush.bf16.msk.msrb.mxu0 %vm4331_vm5, %v3668_v51  ;;  %1299 = vmatpush.bf16.msrb.mxu1 %v1278_v36  ;;  %v5047_v43 = vsel %vm4358_vm6, 4294967295, %v5046_v43  ;;  %vm4367_vm10 = vmpackc.low %vm1184_vm2, %vm1183_vm9  ;;  %vm1166_vm9 = vcmp.eq.s32.totalorder %v4191_v22, %v4196_v33  ;;  %v3023_v29 = vld [vmem:[%s4997_s3 + $0x100] sm:$0x33] }
 0x132   : > { %v5049_v44 = vsel %vm4367_vm10, 4294967295, %v5048_v44 }
 0x134   : > { %2906 = vmatpush.bf16.msk.msra.mxu2 %vm4312_vm12, %v3668_v51  ;;  %vm1222_vm12 = vcmp.eq.s32.totalorder %v1146_v40, %v4218_v62  ;;  %v2956_v40 = vor.u32 %v3493_v38, %v2955_v37  ;;  %v3486_v37 = vld [vmem:[%s4997_s3 + $0x5c] sm:$0xf] }
 0x135   : > { %2889 = vmatpush.bf16.msk.msrb.mxu0 %vm4358_vm6, %v3668_v51  ;;  %2893 = vmatpush.bf16.msk.msrb.mxu1 %vm4367_vm10, %v3668_v51  ;;  %vm4376_vm14 = vmpackc.low %vm1222_vm12, %vm1221_vm0  ;;  %vm1181_vm10 = vcmp.eq.s32.totalorder %v1159_v45, %v4196_v33  ;;  %vm1182_vm12 = vcmp.eq.s32.totalorder %v1160_v46, %v4196_v33  ;;  %vm1236_vm6 = vcmp.eq.s32.totalorder %v1160_v46, %v4218_v62 }
 0x136   : > { %v5051_v48 = vsel %vm4376_vm14, 4294967295, %v5050_v48  ;;  %vm4396_vm0 = vmpackc.low %vm1166_vm9, %vm1165_vm4 }
 0x137   : > { %vm4409_vm5 = vmpackc.low %vm1182_vm12, %vm1181_vm10  ;;  %vm1432_vm10 = vcmask 1041408   ;;  %vm1343_vm12 = vcmask 685056  }
 0x138   : > { %2908 = vmatpush.bf16.msk.msra.mxu2 %vm4342_vm13, %v3668_v51  ;;  %vm1238_vm13 = vcmp.eq.s32.totalorder %v1162_v42, %v4218_v62  ;;  %v1434_v59 = vsel %vm1432_vm10, %v1417_v57, 0  ;;  %v1437_v61 = vsel %vm1432_vm10, %v1418_v58, 0  ;;  %v1526_v34 = vsel %vm1432_vm10, %v1510_v30, 0  ;;  %v2957_v42 = vld [vmem:[%s4997_s3 + $0x90] sm:$0xf0] }
 0x139   : > { %vm4383_vm2 = vmpackc.low %vm1238_vm13, %vm1237_vm7  ;;  %vm1219_vm7 = vcmp.eq.s32.totalorder %v4188_v5, %v4218_v62  ;;  %vm1220_vm13 = vcmp.eq.s32.totalorder %v4191_v22, %v4218_v62  ;;  %2891 = vmatpush.bf16.msk.msrb.mxu0 %vm4396_vm0, %v3668_v51  ;;  %2895 = vmatpush.bf16.msk.msrb.mxu1 %vm4409_vm5, %v3668_v51  ;;  %v1529_v36 = vsel %vm1432_vm10, %v1511_v31, 0  ;;  %v2960_v46 = vor.u32 %v3492_v41, %v2957_v42  ;;  %v2947_v57 = vld [vmem:[%s4997_s3 + $0x78] sm:$0xf]  ;;  %v3491_v58 = vld [vmem:[%s4997_s3 + $0x7c] sm:$0xf0] }
 0x13a   : > { %2914 = vmatpush.bf16.msk.msra.mxu3 %vm4383_vm2, %v3668_v51  ;;  %vm4416_vm4 = vmpackc.low %vm1220_vm13, %vm1219_vm7  ;;  %v1605_v31 = vunpack.c.l.b16 %v3023_v29  ;;  %v2981_v41 = vld [vmem:[%s4997_s3 + $0x10] sm:$0xf]  ;;  %v3479_v42 = vld [vmem:[%s4997_s3 + $0x14] sm:$0xf0]  ;;  %vm5067_vm7 = vnez %v5033_v17  ;;  %vm5068_vm13 = vnez %v5037_v24 }
 0x13b   : > { %v3530_v5 = vld [vmem:[%s4999_s5 + $0x20] sm:$0xff] }
 0x13c   : > { %2910 = vmatpush.bf16.msk.msra.mxu2 %vm4376_vm14, %v3668_v51  ;;  %vm1235_vm14 = vcmp.eq.s32.totalorder %v1159_v45, %v4218_v62  ;;  %v3005_v45 = vld [vmem:[%s4997_s3 + $0x40] sm:$0xf] }
 0x13d   : > { %vm4423_vm9 = vmpackc.low %vm1236_vm6, %vm1235_vm14  ;;  %1441 = vmatpush.bf16.msra.mxu0 %v1434_v59  ;;  %1455 = vmatpush.bf16.msra.mxu1 %v1437_v61  ;;  %vm1272_vm6 = vcmask 326656   ;;  %v3490_v59 = vld [vmem:[%s4997_s3 + $0x7c] sm:$0xf]  ;;  %v2948_v61 = vor.u32 %v3491_v58, %v2947_v57  ;;  %vm1341_vm14 = vcmask 687104  }
 0x13e   : > { %2916 = vmatpush.bf16.msk.msra.mxu3 %vm4423_vm9, %v3668_v51 }
 0x140   : > { %2912 = vmatpush.bf16.msk.msra.mxu2 %vm4416_vm4, %v3668_v51 }
 0x141   : > { %1442 = vmatpush.bf16.msra.mxu0 %v2964_v28  ;;  %1456 = vmatpush.bf16.msra.mxu1 %v2968_v32  ;;  %v2991_v28 = vld [vmem:[%s4997_s3 + $0x28] sm:$0xf0]  ;;  %v1606_v32 = vunpack.c.h.b16 %v3023_v29  ;;  %v3502_v29 = vld [vmem:[%s4997_s3 + $0xe4] sm:$0xf] }
 0x142   : > { %1533 = vmatpush.bf16.msrb.mxu3 %v1526_v34  ;;  %v2994_v30 = vor.u32 %v3480_v26, %v2991_v28  ;;  %v2931_v34 = vld [vmem:[%s4997_s3 + $0x58] sm:$0xf]  ;;  %v3503_v28 = vld [vmem:[%s4997_s3 + $0xe4] sm:$0xf0] }
 0x144   : > { %1547 = vmatpush.bf16.msrb.mxu2 %v1529_v36  ;;  %v3487_v36 = vld [vmem:[%s4997_s3 + $0x5c] sm:$0xf0] }
 0x145   : > { %1443 = vmatpush.bf16.msra.mxu0 %v2956_v40  ;;  %1457 = vmatpush.bf16.msra.mxu1 %v2960_v46  ;;  %v2932_v38 = vor.u32 %v3487_v36, %v2931_v34  ;;  %v2933_v40 = vld [vmem:[%s4997_s3 + $0x60] sm:$0xf0]  ;;  %v1618_v46 = vpack.c.b16 %v1606_v32, %v1606_v32  ;;  %v3111_v32 = vld [vmem:[%s4997_s3 + $0x148] sm:$0xf]  ;;  %v3515_v34 = vld [vmem:[%s4997_s3 + $0x14c] sm:$0xf0] }
 0x147   : > { %v1636_v58 = vsel %vm1432_vm10, %v1618_v46, 0  ;;  %v3500_v46 = vld [vmem:[%s4997_s3 + $0xd4] sm:$0xf] }
 0x149   : > { %1444 = vmatpush.bf16.msra.mxu0 %v2948_v61 }
 0x199   : > { %v1089_v55 = vpop.f32.mrf.mxu2 }
 0x19a   : > { %v1103_v56 = vpop.f32.mrf.mxu3 }
 0x1a1   : > { %v1091_v62 = vpop.f32.mrf.mxu2 }
 0x1a2   : > { %v1105_v63 = vpop.f32.mrf.mxu3 }
 0x1a9   : > { %v1120_v0 = vpop.f32.mrf.mxu2 }
 0x1aa   : > { %v1134_v1 = vpop.f32.mrf.mxu3  ;;  %v1139_v4 = vmax.f32 %v1089_v55, %v1120_v0  ;;  %v3006_v55 = vor.u32 %v3485_v52, %v3005_v45  ;;  %v3483_v0 = vld [vmem:[%s4997_s3 + $0x34] sm:$0xf0]  ;;  %v1617_v45 = vpack.c.b16 %v1605_v31, %v1605_v31  ;;  %v2936_v52 = vor.u32 %v3486_v37, %v2933_v40  ;;  %v3052_v31 = vld [vmem:[%s4997_s3 + $0xe8] sm:$0xf0]  ;;  %v3113_v40 = vld [vmem:[%s4997_s3 + $0x150] sm:$0xf0] }
 0x1ab   : > { %v1140_v9 = vmax.f32 %v1103_v56, %v1134_v1  ;;  %v3010_v56 = vor.u32 %v3484_v53, %v3007_v54  ;;  %v2982_v53 = vor.u32 %v3479_v42, %v2981_v41  ;;  %v3478_v54 = vld [vmem:[%s4997_s3 + $0x14] sm:$0xf]  ;;  %v3055_v36 = vor.u32 %v3502_v29, %v3052_v31  ;;  %v3042_v42 = vld [vmem:[%s4997_s3 + $0xd0] sm:$0xf]  ;;  %v3509_v29 = vld [vmem:[%s4997_s3 + $0x11c] sm:$0xf0] }
 0x1ac   : > { %1534 = vmatpush.bf16.msrb.mxu3 %v3006_v55  ;;  %v2983_v55 = vld [vmem:[%s4997_s3 + $0x18] sm:$0xf0]  ;;  %v1633_v57 = vsel %vm1432_vm10, %v1617_v45, 0  ;;  %v3112_v37 = vor.u32 %v3515_v34, %v3111_v32  ;;  %v3501_v45 = vld [vmem:[%s4997_s3 + $0xd4] sm:$0xf0] }
 0x1ad   : > { %1548 = vmatpush.bf16.msrb.mxu2 %v3010_v56  ;;  %v2986_v56 = vor.u32 %v3478_v54, %v2983_v55  ;;  %v3103_v54 = vld [vmem:[%s4997_s3 + $0x138] sm:$0xf]  ;;  %v3513_v55 = vld [vmem:[%s4997_s3 + $0x13c] sm:$0xf0]  ;;  %v3089_v32 = vld [vmem:[%s4997_s3 + $0x120] sm:$0xf0] }
 0x1b1   : > { %v1122_v2 = vpop.f32.mrf.mxu2 }
 0x1b2   : > { %v1141_v6 = vmax.f32 %v1091_v62, %v1122_v2  ;;  %v1136_v8 = vpop.f32.mrf.mxu3  ;;  %v2949_v62 = vld [vmem:[%s4997_s3 + $0x80] sm:$0xf0] }
 0x1b3   : > { %v1142_v10 = vmax.f32 %v1105_v63, %v1136_v8  ;;  %v2997_v63 = vld [vmem:[%s4997_s3 + $0x30] sm:$0xf]  ;;  %v2952_v1 = vor.u32 %v3490_v59, %v2949_v62  ;;  %v3076_v59 = vld [vmem:[%s4997_s3 + $0x158] sm:$0x33] }
 0x1b4   : > { %v1143_v11 = vpack.c.bf16 %v1141_v6, %v1139_v4  ;;  %v2998_v2 = vor.u32 %v3483_v0, %v2997_v63  ;;  %v3482_v4 = vld [vmem:[%s4997_s3 + $0x34] sm:$0xf]  ;;  %v2999_v6 = vld [vmem:[%s4997_s3 + $0x38] sm:$0xf0]  ;;  %v1716_v61 = vunpack.c.l.b16 %v3076_v59  ;;  %v1717_v62 = vunpack.c.h.b16 %v3076_v59  ;;  %v2973_v63 = vld [vmem:[%s4997_s3] sm:$0xf] }
 0x1b5   : > { %v1144_v12 = vpack.c.bf16 %v1142_v10, %v1140_v9  ;;  %v3002_v8 = vor.u32 %v3482_v4, %v2999_v6  ;;  %1458 = vmatpush.bf16.msra.mxu1 %v2952_v1  ;;  %v2939_v9 = vld [vmem:[%s4997_s3 + $0x68] sm:$0xf]  ;;  %v3489_v10 = vld [vmem:[%s4997_s3 + $0x6c] sm:$0xf0]  ;;  %v3476_v1 = vld [vmem:[%s4997_s3 + $0x4] sm:$0xf] }
 0x1b6   : > { %1288 = vmatmul.bf16.vlgmr.msrb.gmra.mxu0 %v1143_v11  ;;  %1319 = vmatmul.bf16.vlgmr.msra.gmra.mxu2 %v1143_v11  ;;  %v3488_v11 = vld [vmem:[%s4997_s3 + $0x6c] sm:$0xf]  ;;  %v3477_v0 = vld [vmem:[%s4997_s3 + $0x4] sm:$0xf0]  ;;  %v3058_v6 = vld [vmem:[%s4997_s3 + $0xf0] sm:$0xf] }
 0x1b7   : > { %2896 = vmatmul.msk.bf16.vlgmr.msrb.gmra.mxu1 %vm1272_vm6, %v1144_v12  ;;  %2917 = vmatmul.msk.bf16.vlgmr.msra.gmra.mxu3 %vm1272_vm6, %v1144_v12  ;;  %v2940_v12 = vor.u32 %v3489_v10, %v2939_v9  ;;  %v2944_v20 = vor.u32 %v3488_v11, %v2941_v13  ;;  %v2975_v4 = vld [vmem:[%s4997_s3 + $0x8] sm:$0xf0]  ;;  %v1728_v9 = vpack.c.b16 %v1716_v61, %v1716_v61  ;;  %v3504_v13 = vld [vmem:[%s4997_s3 + $0xf4] sm:$0xf]  ;;  %v3105_v59 = vld [vmem:[%s4997_s3 + $0x140] sm:$0xf0] }
 0x1b8   : > { %1535 = vmatpush.bf16.msrb.mxu3 %v2998_v2  ;;  %1549 = vmatpush.bf16.msrb.mxu2 %v3002_v8  ;;  %v2974_v2 = vor.u32 %v3477_v0, %v2973_v63  ;;  %v3505_v8 = vld [vmem:[%s4997_s3 + $0xf4] sm:$0xf0]  ;;  %v1729_v10 = vpack.c.b16 %v1717_v62, %v1717_v62  ;;  %v2978_v11 = vor.u32 %v3476_v1, %v2975_v4  ;;  %v3034_v62 = vld [vmem:[%s4997_s3 + $0xc0] sm:$0xf]  ;;  %v3499_v63 = vld [vmem:[%s4997_s3 + $0xc4] sm:$0xf0] }
 0x1b9   : > { %1445 = vmatpush.bf16.msra.mxu0 %v2940_v12  ;;  %1459 = vmatpush.bf16.msra.mxu1 %v2944_v20  ;;  %v3059_v12 = vor.u32 %v3505_v8, %v3058_v6  ;;  %v3063_v20 = vor.u32 %v3504_v13, %v3060_v18  ;;  %v3498_v0 = vld [vmem:[%s4997_s3 + $0xc4] sm:$0xf]  ;;  %v3035_v1 = vor.u32 %v3499_v63, %v3034_v62  ;;  %v3095_v4 = vld [vmem:[%s4997_s3 + $0x128] sm:$0xf]  ;;  %v3511_v6 = vld [vmem:[%s4997_s3 + $0x12c] sm:$0xf0] }
 0x1ba   : > { %v1747_v26 = vsel %vm1432_vm10, %v1729_v10, 0  ;;  %v3510_v10 = vld [vmem:[%s4997_s3 + $0x12c] sm:$0xf]  ;;  %v3497_v18 = vld [vmem:[%s4997_s3 + $0xb4] sm:$0xf0]  ;;  %vm5071_vm6 = vnez %v5051_v48 }
 0x1bc   : > { %1536 = vmatpush.bf16.msrb.mxu3 %v2990_v21  ;;  %1550 = vmatpush.bf16.msrb.mxu2 %v2994_v30  ;;  %v1744_v21 = vsel %vm1432_vm10, %v1728_v9, 0  ;;  %v3051_v30 = vor.u32 %v3503_v28, %v3050_v19  ;;  %v3096_v9 = vor.u32 %v3511_v6, %v3095_v4  ;;  %v3496_v19 = vld [vmem:[%s4997_s3 + $0xb4] sm:$0xf]  ;;  %v3087_v28 = vld [vmem:[%s4997_s3 + $0x118] sm:$0xf] }
 0x1bd   : > { %1446 = vmatpush.bf16.msra.mxu0 %v2932_v38  ;;  %1460 = vmatpush.bf16.msra.mxu1 %v2936_v52  ;;  %v3514_v38 = vld [vmem:[%s4997_s3 + $0x14c] sm:$0xf]  ;;  %v3043_v52 = vor.u32 %v3501_v45, %v3042_v42 }
 0x1be   : > { %v3116_v41 = vor.u32 %v3514_v38, %v3113_v40  ;;  %v3079_v40 = vld [vmem:[%s4997_s3 + $0x108] sm:$0xf]  ;;  %v3506_v45 = vld [vmem:[%s4997_s3 + $0x10c] sm:$0xf] }
 0x1c0   : > { %1537 = vmatpush.bf16.msrb.mxu3 %v2982_v53  ;;  %1551 = vmatpush.bf16.msrb.mxu2 %v2986_v56  ;;  %v3044_v53 = vld [vmem:[%s4997_s3 + $0xd8] sm:$0xf0] }
 0x1c1   : > { %1640 = vmatpush.bf16.msrb.mxu0 %v1633_v57  ;;  %1654 = vmatpush.bf16.msrb.mxu1 %v1636_v58  ;;  %v3047_v56 = vor.u32 %v3500_v46, %v3044_v53  ;;  %v3104_v57 = vor.u32 %v3513_v55, %v3103_v54  ;;  %v3512_v58 = vld [vmem:[%s4997_s3 + $0x13c] sm:$0xf]  ;;  %v3081_v46 = vld [vmem:[%s4997_s3 + $0x110] sm:$0xf0] }
 0x1c2   : > { %v3108_v61 = vor.u32 %v3512_v58, %v3105_v59 }
 0x1c4   : > { %1538 = vmatpush.bf16.msrb.mxu3 %v2974_v2  ;;  %1552 = vmatpush.bf16.msrb.mxu2 %v2978_v11  ;;  %v3036_v2 = vld [vmem:[%s4997_s3 + $0xc8] sm:$0xf0]  ;;  %v3097_v11 = vld [vmem:[%s4997_s3 + $0x130] sm:$0xf0] }
 0x1c5   : > { %1641 = vmatpush.bf16.msrb.mxu0 %v3059_v12  ;;  %1655 = vmatpush.bf16.msrb.mxu1 %v3063_v20  ;;  %v3039_v8 = vor.u32 %v3498_v0, %v3036_v2  ;;  %v3026_v12 = vld [vmem:[%s4997_s3 + $0xb0] sm:$0xf]  ;;  %v3100_v13 = vor.u32 %v3510_v10, %v3097_v11  ;;  %v3028_v20 = vld [vmem:[%s4997_s3 + $0xb8] sm:$0xf0] }
 0x1c6   : > { %v3027_v31 = vor.u32 %v3497_v18, %v3026_v12  ;;  %v3031_v34 = vor.u32 %v3496_v19, %v3028_v20  ;;  %v3164_v19 = vld [vmem:[%s4997_s3 + $0x1a0] sm:$0xf]  ;;  %v3525_v20 = vld [vmem:[%s4997_s3 + $0x1a4] sm:$0xf0] }
 0x1c8   : > { %1751 = vmatpush.bf16.msra.mxu3 %v1744_v21  ;;  %1765 = vmatpush.bf16.msra.mxu2 %v1747_v26 }
 0x1c9   : > { %1642 = vmatpush.bf16.msrb.mxu0 %v3051_v30  ;;  %1656 = vmatpush.bf16.msrb.mxu1 %v3055_v36  ;;  %v3508_v30 = vld [vmem:[%s4997_s3 + $0x11c] sm:$0xf]  ;;  %v3088_v36 = vor.u32 %v3509_v29, %v3087_v28  ;;  %v3524_v28 = vld [vmem:[%s4997_s3 + $0x1a4] sm:$0xf]  ;;  %v3166_v29 = vld [vmem:[%s4997_s3 + $0x1a8] sm:$0xf0] }
 0x1ca   : > { %v3092_v38 = vor.u32 %v3508_v30, %v3089_v32  ;;  %v3165_v30 = vor.u32 %v3525_v20, %v3164_v19  ;;  %v3156_v32 = vld [vmem:[%s4997_s3 + $0x190] sm:$0xf] }
 0x1cc   : > { %1752 = vmatpush.bf16.msra.mxu3 %v3112_v37  ;;  %1766 = vmatpush.bf16.msra.mxu2 %v3116_v41  ;;  %v3507_v41 = vld [vmem:[%s4997_s3 + $0x10c] sm:$0xf0] }
 0x1cd   : > { %1643 = vmatpush.bf16.msrb.mxu0 %v3043_v52  ;;  %1657 = vmatpush.bf16.msrb.mxu1 %v3047_v56  ;;  %v3080_v54 = vor.u32 %v3507_v41, %v3079_v40  ;;  %v3084_v56 = vor.u32 %v3506_v45, %v3081_v46  ;;  %v3148_v41 = vld [vmem:[%s4997_s3 + $0x180] sm:$0xf]  ;;  %v3520_v45 = vld [vmem:[%s4997_s3 + $0x184] sm:$0xf]  ;;  %v3150_v46 = vld [vmem:[%s4997_s3 + $0x188] sm:$0xf0] }
 0x1d0   : > { %1753 = vmatpush.bf16.msra.mxu3 %v3104_v57  ;;  %1767 = vmatpush.bf16.msra.mxu2 %v3108_v61 }
 0x1d1   : > { %1644 = vmatpush.bf16.msrb.mxu0 %v3035_v1  ;;  %1658 = vmatpush.bf16.msrb.mxu1 %v3039_v8  ;;  %v3129_v1 = vld [vmem:[%s4997_s3 + $0x1b0] sm:$0x33] }
 0x1d2   : > { %v1827_v2 = vunpack.c.l.b16 %v3129_v1  ;;  %v1828_v4 = vunpack.c.h.b16 %v3129_v1 }
 0x1d4   : > { %1754 = vmatpush.bf16.msra.mxu3 %v3096_v9  ;;  %1768 = vmatpush.bf16.msra.mxu2 %v3100_v13  ;;  %v1839_v6 = vpack.c.b16 %v1827_v2, %v1827_v2  ;;  %v1840_v8 = vpack.c.b16 %v1828_v4, %v1828_v4  ;;  %v3132_v2 = vld [vmem:[%s4997_s3 + $0x160] sm:$0xf] }
 0x1d5   : > { %1645 = vmatpush.bf16.msrb.mxu0 %v3027_v31  ;;  %1659 = vmatpush.bf16.msrb.mxu1 %v3031_v34  ;;  %v3169_v31 = vor.u32 %v3524_v28, %v3166_v29  ;;  %v3523_v34 = vld [vmem:[%s4997_s3 + $0x194] sm:$0xf0] }
 0x1d8   : > { %1755 = vmatpush.bf16.msra.mxu3 %v3088_v36  ;;  %1769 = vmatpush.bf16.msra.mxu2 %v3092_v38  ;;  %v3522_v36 = vld [vmem:[%s4997_s3 + $0x194] sm:$0xf]  ;;  %v3157_v38 = vor.u32 %v3523_v34, %v3156_v32 }
 0x1dc   : > { %1756 = vmatpush.bf16.msra.mxu3 %v3080_v54  ;;  %1770 = vmatpush.bf16.msra.mxu2 %v3084_v56  ;;  %v3140_v54 = vld [vmem:[%s4997_s3 + $0x170] sm:$0xf]  ;;  %v3518_v56 = vld [vmem:[%s4997_s3 + $0x174] sm:$0xf] }
 0x233   : > { %v1289_v21 = vpop.f32.mrf.mxu0 }
 0x234   : > { %v1303_v26 = vpop.f32.mrf.mxu1 }
 0x235   : > { %v1304_v52 = vadd.f32 %v1303_v26, %v1289_v21  ;;  %v1855_v21 = vsel %vm1432_vm10, %v1839_v6, 0  ;;  %v1858_v26 = vsel %vm1432_vm10, %v1840_v8, 0  ;;  %v3517_v6 = vld [vmem:[%s4997_s3 + $0x164] sm:$0xf0]  ;;  %v3516_v8 = vld [vmem:[%s4997_s3 + $0x164] sm:$0xf] }
 0x239   : > { %v1320_v37 = vpop.f32.mrf.mxu2 }
 0x23a   : > { %v1334_v42 = vpop.f32.mrf.mxu3 }
 0x23b   : > { %v1335_v53 = vadd.f32 %v1334_v42, %v1320_v37  ;;  %v1291_v57 = vpop.f32.mrf.mxu0  ;;  %v3158_v37 = vld [vmem:[%s4997_s3 + $0x198] sm:$0xf0]  ;;  %v3521_v42 = vld [vmem:[%s4997_s3 + $0x184] sm:$0xf0] }
 0x23c   : > { %v1305_v58 = vpop.f32.mrf.mxu1  ;;  %v3161_v40 = vor.u32 %v3522_v36, %v3158_v37  ;;  %v1892_v36 = vld [vmem:[%s4998_s4] sm:$0x3] }
 0x23d   : > { %v1339_v55 = vmax.f32 %v1304_v52, %v1335_v53  ;;  %v1306_v62 = vadd.f32 %v1305_v58, %v1291_v57  ;;  %v3149_v52 = vor.u32 %v3521_v42, %v3148_v41  ;;  %v3153_v53 = vor.u32 %v3520_v45, %v3150_v46 }
 0x23e   : > { %v1894_v46 = vperm.slane %v1892_v36, 0 }
 0x23f   : > { %1342 = vst.msk [vmem:[#allocation2] sm:$0xff] %vm1341_vm14, %v1339_v55  ;;  %v3519_v55 = vld [vmem:[%s4997_s3 + $0x174] sm:$0xf0] }
 0x241   : > { %v1322_v59 = vpop.f32.mrf.mxu2 }
 0x242   : > { %v1336_v61 = vpop.f32.mrf.mxu3 }
 0x243   : > { %v1337_v63 = vadd.f32 %v1336_v61, %v1322_v59  ;;  %v3142_v59 = vld [vmem:[%s4997_s3 + $0x178] sm:$0xf0] }
 0x244   : > { %v3145_v1 = vor.u32 %v3518_v56, %v3142_v59 }
 0x245   : > { %v1340_v0 = vmax.f32 %v1306_v62, %v1337_v63 }
 0x246   : > { %v1345_v9 = vld [vmem:[#allocation2] sm:$0xff] }
 0x247   : > { %1344 = vst.msk [vmem:[#allocation2 + $0x8] sm:$0x3f] %vm1343_vm12, %v1340_v0  ;;  %v3141_v0 = vor.u32 %v3519_v55, %v3140_v54  ;;  %vm1980_vm12 = vcmask 261120  }
 0x24e   : > { %v1359_v10 = vld [vmem:[#allocation2 + $0x1] sm:$0xff]  ;;  %v1360_v11 = vld [vmem:[#allocation2 + $0x9] sm:$0x3]  ;;  %v1671_v62 = vld [vmem:[#allocation2 + $0xb] sm:$0x3] }
 0x24f   : > { %v1346_v12 = vld [vmem:[#allocation2 + $0x8] sm:$0x3]  ;;  %v1361_v13 = vpack.c.bf16 %v1360_v11, %v1359_v10  ;;  %v1560_v58 = vld [vmem:[#allocation2 + $0xa] sm:$0x3]  ;;  %v3133_v10 = vor.u32 %v3517_v6, %v3132_v2 }
 0x250   : > { %v1347_v18 = vpack.c.bf16 %v1346_v12, %v1345_v9  ;;  %v1559_v57 = vld [vmem:[#allocation2 + $0x2] sm:$0xff]  ;;  %v3134_v9 = vld [vmem:[%s4997_s3 + $0x168] sm:$0xf0] }
 0x251   : > { %2969 = vmatmul.msk.bf16.vlgmr.msra.gmra.mxu0 %vm1341_vm14, %v1361_v13  ;;  %2970 = vmatmul.msk.bf16.vlgmr.msra.gmra.mxu1 %vm1341_vm14, %v1361_v13  ;;  %v1670_v61 = vld [vmem:[#allocation2 + $0x3] sm:$0xff]  ;;  %v1561_v63 = vpack.c.bf16 %v1560_v58, %v1559_v57  ;;  %v3137_v11 = vor.u32 %v3516_v8, %v3134_v9  ;;  %v1782_v13 = vld [vmem:[#allocation2 + $0xc] sm:$0x3] }
 0x252   : > { %3011 = vmatmul.msk.bf16.vlgmr.msrb.gmra.mxu3 %vm1341_vm14, %v1347_v18  ;;  %3012 = vmatmul.msk.bf16.vlgmr.msrb.gmra.mxu2 %vm1341_vm14, %v1347_v18  ;;  %v1672_v4 = vpack.c.bf16 %v1671_v62, %v1670_v61  ;;  %v1781_v12 = vld [vmem:[#allocation2 + $0x4] sm:$0xff] }
 0x253   : > { %1862 = vmatpush.bf16.msra.mxu0 %v1855_v21  ;;  %1876 = vmatpush.bf16.msra.mxu1 %v1858_v26  ;;  %v1783_v18 = vpack.c.bf16 %v1782_v13, %v1781_v12 }
 0x257   : > { %1863 = vmatpush.bf16.msra.mxu0 %v3165_v30  ;;  %1877 = vmatpush.bf16.msra.mxu1 %v3169_v31 }
 0x25b   : > { %1864 = vmatpush.bf16.msra.mxu0 %v3157_v38  ;;  %1878 = vmatpush.bf16.msra.mxu1 %v3161_v40 }
 0x25f   : > { %1865 = vmatpush.bf16.msra.mxu0 %v3149_v52  ;;  %1879 = vmatpush.bf16.msra.mxu1 %v3153_v53  ;;  %v1895_v52 = vperm.slane %v1892_v36, 1  ;;  %v3536_v36 = vld [vmem:[%s4999_s5 + $0x50] sm:$0xff] }
 0x261   : > { %3064 = vmatmul.msk.bf16.vlgmr.msrb.gmra.mxu0 %vm1341_vm14, %v1561_v63  ;;  %3065 = vmatmul.msk.bf16.vlgmr.msrb.gmra.mxu1 %vm1341_vm14, %v1561_v63 }
 0x262   : > { %3117 = vmatmul.msk.bf16.vlgmr.msra.gmra.mxu3 %vm1341_vm14, %v1672_v4  ;;  %3118 = vmatmul.msk.bf16.vlgmr.msra.gmra.mxu2 %vm1341_vm14, %v1672_v4 }
 0x263   : > { %1866 = vmatpush.bf16.msra.mxu0 %v3141_v0  ;;  %1880 = vmatpush.bf16.msra.mxu1 %v3145_v1 }
 0x267   : > { %1867 = vmatpush.bf16.msra.mxu0 %v3133_v10  ;;  %1881 = vmatpush.bf16.msra.mxu1 %v3137_v11 }
 0x26b   : > { %3177 = vmatpush.bf16.msk.msrb.mxu1 %vm4204_vm3, %v3668_v51  ;;  %3214 = vmatpush.bf16.msk.msrb.mxu0 %vm4383_vm2, %v3668_v51  ;;  %vm5062_vm3 = vnez %v5043_v35  ;;  %vm5065_vm2 = vnez %v5025_v3 }
 0x26f   : > { %3179 = vmatpush.bf16.msk.msrb.mxu1 %vm4249_vm1, %v3668_v51  ;;  %3216 = vmatpush.bf16.msk.msrb.mxu0 %vm4423_vm9, %v3668_v51  ;;  %vm5063_vm1 = vnez %v5047_v43  ;;  %vm5070_vm9 = vnez %v5045_v39 }
 0x271   : > { %3170 = vmatmul.msk.bf16.vlgmr.msra.gmra.mxu0 %vm1341_vm14, %v1783_v18  ;;  %3171 = vmatmul.msk.bf16.vlgmr.msra.gmra.mxu1 %vm1341_vm14, %v1783_v18 }
 0x273   : > { %3181 = vmatpush.bf16.msk.msrb.mxu1 %vm4267_vm8, %v3668_v51  ;;  %vm1914_vm8 = vcmask 1044480   ;;  %2147 = vmatpush.bf16.msra.mxu0 %v3530_v5 }
 0x277   : > { %3183 = vmatpush.bf16.msk.msrb.mxu1 %vm4289_vm15, %v3668_v51  ;;  %vm1910_vm15 = vcmask 80896  }
 0x27b   : > { %3185 = vmatpush.bf16.msk.msrb.mxu1 %vm4307_vm11, %v3668_v51  ;;  %vm5064_vm11 = vnez %v5049_v44 }
 0x27f   : > { %3187 = vmatpush.bf16.msk.msrb.mxu1 %vm5062_vm3, %v3668_v51  ;;  %vm2094_vm3 = vcmask 654336  }
 0x283   : > { %3189 = vmatpush.bf16.msk.msrb.mxu1 %vm5063_vm1, %v3668_v51  ;;  %vm5072_vm1 = vcmask 1043456  }
 0x287   : > { %3191 = vmatpush.bf16.msk.msrb.mxu1 %vm4396_vm0, %v3668_v51  ;;  %vm5066_vm0 = vnez %v5029_v15 }
 0x2ce   : > { %v1448_v47 = vpop.f32.mrf.mxu0  ;;  %v1462_v14 = vpop.f32.mrf.mxu1 }
 0x2d5   : > { %v1540_v16 = vpop.f32.mrf.mxu3  ;;  %v1554_v23 = vpop.f32.mrf.mxu2 }
 0x2d6   : > { %v1450_v49 = vpop.f32.mrf.mxu0  ;;  %v1464_v22 = vpop.f32.mrf.mxu1  ;;  %v1541_v43 = vadd.f32 %v1540_v16, %v1448_v47  ;;  %v1555_v30 = vadd.f32 %v1554_v23, %v1462_v14  ;;  %v1908_v47 = vpack.c.bf16 %v4214_v60, %v4214_v60  ;;  %v1909_v14 = vpack.c.bf16 %v4235_v7, %v4235_v7  ;;  %v3540_v23 = vld [vmem:[%s4999_s5 + $0x70] sm:$0xff] }
 0x2d7   : > { %2206 = vmatpush.bf16.msra.mxu1 %v3540_v23 }
 0x2dd   : > { %v1542_v25 = vpop.f32.mrf.mxu3  ;;  %v1556_v19 = vpop.f32.mrf.mxu2 }
 0x2de   : > { %v1647_v20 = vpop.f32.mrf.mxu0  ;;  %v1661_v21 = vpop.f32.mrf.mxu1  ;;  %v1543_v37 = vadd.f32 %v1542_v25, %v1450_v49  ;;  %v1557_v38 = vadd.f32 %v1556_v19, %v1464_v22  ;;  %v3545_v49 = vld [vmem:[%s4999_s5 + $0x98] sm:$0xff]  ;;  %v3534_v22 = vld [vmem:[%s4999_s5 + $0x40] sm:$0xff]  ;;  %v3539_v19 = vld [vmem:[%s4999_s5 + $0x68] sm:$0xff] }
 0x2df   : > { %v1666_v50 = vadd.f32 %v1647_v20, %v1541_v43  ;;  %v1667_v34 = vadd.f32 %v1661_v21, %v1555_v30  ;;  %v3529_v25 = vld [vmem:[%s4999_s5 + $0x18] sm:$0xff]  ;;  %v3544_v20 = vld [vmem:[%s4999_s5 + $0x90] sm:$0xff]  ;;  %2207 = vmatpush.bf16.msra.mxu1 %v3539_v19  ;;  %v3527_v43 = vld [vmem:[%s4999_s5 + $0x8] sm:$0xff] }
 0x2e0   : > { %2148 = vmatpush.bf16.msra.mxu0 %v3529_v25  ;;  %v3533_v21 = vld [vmem:[%s4999_s5 + $0x38] sm:$0xff]  ;;  %v3560_v19 = vld [vmem:[%s5003_s9 + $0x10] sm:$0xff] }
 0x2e1   : > { %v3537_v30 = vld [vmem:[%s4999_s5 + $0x58] sm:$0xff] }
 0x2e5   : > { %v1758_v28 = vpop.f32.mrf.mxu3  ;;  %v1772_v29 = vpop.f32.mrf.mxu2 }
 0x2e6   : > { %v1649_v35 = vpop.f32.mrf.mxu0  ;;  %v1663_v26 = vpop.f32.mrf.mxu1  ;;  %v1777_v40 = vadd.f32 %v1758_v28, %v1666_v50  ;;  %v1778_v41 = vadd.f32 %v1772_v29, %v1667_v34  ;;  %v3543_v28 = vld [vmem:[%s4999_s5 + $0x88] sm:$0xff]  ;;  %v3532_v29 = vld [vmem:[%s4999_s5 + $0x30] sm:$0xff]  ;;  %v3526_v34 = vld [vmem:[%s4999_s5] sm:$0xff] }
 0x2e7   : > { %v1668_v53 = vadd.f32 %v1649_v35, %v1543_v37  ;;  %v1669_v54 = vadd.f32 %v1663_v26, %v1557_v38  ;;  %v3528_v35 = vld [vmem:[%s4999_s5 + $0x10] sm:$0xff]  ;;  %v3538_v26 = vld [vmem:[%s4999_s5 + $0x60] sm:$0xff]  ;;  %v3541_v37 = vld [vmem:[%s4999_s5 + $0x78] sm:$0xff] }
 0x2e8   : > { %2149 = vmatpush.bf16.msra.mxu0 %v3528_v35  ;;  %2208 = vmatpush.bf16.msra.mxu1 %v3538_v26  ;;  %v3550_v38 = vld [vmem:[%s4999_s5 + $0xc0] sm:$0xff] }
 0x2ec   : > { %2150 = vmatpush.bf16.msra.mxu0 %v3527_v43  ;;  %2209 = vmatpush.bf16.msra.mxu1 %v3537_v30 }
 0x2ed   : > { %v1760_v42 = vpop.f32.mrf.mxu3  ;;  %v1774_v45 = vpop.f32.mrf.mxu2 }
 0x2ee   : > { %v1869_v31 = vpop.f32.mrf.mxu0  ;;  %v1883_v32 = vpop.f32.mrf.mxu1  ;;  %v1779_v57 = vadd.f32 %v1760_v42, %v1668_v53  ;;  %v1780_v58 = vadd.f32 %v1774_v45, %v1669_v54  ;;  %v3548_v45 = vld [vmem:[%s4999_s5 + $0xb0] sm:$0xff]  ;;  %v3546_v54 = vld [vmem:[%s4999_s5 + $0xa0] sm:$0xff] }
 0x2ef   : > { %v1888_v55 = vadd.f32 %v1869_v31, %v1777_v40  ;;  %v1889_v56 = vadd.f32 %v1883_v32, %v1778_v41  ;;  %v3542_v31 = vld [vmem:[%s4999_s5 + $0x80] sm:$0xff]  ;;  %v3531_v32 = vld [vmem:[%s4999_s5 + $0x28] sm:$0xff]  ;;  %v3549_v41 = vld [vmem:[%s4999_s5 + $0xb8] sm:$0xff] }
 0x2f0   : > { %2151 = vmatpush.bf16.msra.mxu0 %v3526_v34  ;;  %2210 = vmatpush.bf16.msra.mxu1 %v3536_v36  ;;  %v3559_v34 = vld [vmem:[%s5003_s9 + $0x8] sm:$0xff]  ;;  %v3558_v36 = vld [vmem:[%s5003_s9] sm:$0xff] }
 0x2f1   : > { %v1898_v62 = vadd.f32 %v1894_v46, %v1888_v55  ;;  %v1899_v63 = vadd.f32 %v1895_v52, %v1889_v56 }
 0x2f3   : > { %v1902_v6 = vmax.f32 %v1898_v62, 0.0  ;;  %v1903_v8 = vmax.f32 %v1899_v63, 0.0 }
 0x2f6   : > { %v1871_v59 = vpop.f32.mrf.mxu0  ;;  %v1885_v61 = vpop.f32.mrf.mxu1 }
 0x2f7   : > { %v1890_v0 = vadd.f32 %v1871_v59, %v1779_v57  ;;  %v1891_v1 = vadd.f32 %v1885_v61, %v1780_v58 }
 0x2f9   : > { %v1900_v2 = vadd.f32 %v1894_v46, %v1890_v0  ;;  %v1901_v4 = vadd.f32 %v1895_v52, %v1891_v1  ;;  %v3547_v46 = vld [vmem:[%s4999_s5 + $0xa8] sm:$0xff] }
 0x2fb   : > { %v1904_v9 = vmax.f32 %v1900_v2, 0.0  ;;  %v1905_v10 = vmax.f32 %v1901_v4, 0.0 }
 0x2fd   : > { %v1906_v11 = vpack.c.bf16 %v1904_v9, %v1902_v6  ;;  %v1907_v12 = vpack.c.bf16 %v1905_v10, %v1903_v8 }
 0x2ff   : > { %v1916_v13 = vsel %vm1914_vm8, %v1906_v11, 0  ;;  %v1919_v18 = vsel %vm1914_vm8, %v1907_v12, 0  ;;  %v2355_v11 = vld [vmem:[%s5001_s7 + $0x38] sm:$0xf]  ;;  %vm2488_vm8 = vcmask 73728  }
 0x300   : > { %1928 = vmatpush.bf16.msrb.mxu3 %v1916_v13  ;;  %1941 = vmatpush.bf16.msrb.mxu2 %v1919_v18  ;;  %v2386_v12 = vunpack.c.l.b16 %v2355_v11 }
 0x303   : > { %3172 = vmatmul.msk.bf16.vlgmr.msrb.gmra.mxu3 %vm1910_vm15, %v1908_v47  ;;  %3173 = vmatmul.msk.bf16.vlgmr.msrb.gmra.mxu2 %vm1910_vm15, %v1908_v47  ;;  %v3557_v47 = vld [vmem:[%s5001_s7 + $0x30] sm:$0xff] }
 0x304   : > { %1957 = vmatpush.bf16.msra.mxu3 %v1916_v13  ;;  %3193 = vmatpush.bf16.msk.msra.mxu2 %vm5064_vm11, %v3668_v51  ;;  %v2394_v13 = vpack.c.b16 %v2386_v12, %v2386_v12 }
 0x308   : > { %1970 = vmatpush.bf16.msrb.mxu3 %v1919_v18  ;;  %3195 = vmatpush.bf16.msk.msra.mxu2 %vm4409_vm5, %v3668_v51  ;;  %vm5069_vm5 = vnez %v5041_v27  ;;  %v2407_v18 = vsel %vm5072_vm1, %v2394_v13, 0 }
 0x313   : > { %3174 = vmatmul.msk.bf16.vlgmr.msra.gmra.mxu3 %vm1910_vm15, %v1909_v14 }
 0x314   : > { %3198 = vmatpush.bf16.msk.msra.mxu3 %vm5065_vm2, %v3668_v51 }
 0x318   : > { %3200 = vmatpush.bf16.msk.msra.mxu3 %vm5066_vm0, %v3668_v51 }
 0x31c   : > { %3202 = vmatpush.bf16.msk.msra.mxu3 %vm5067_vm7, %v3668_v51 }
 0x320   : > { %3204 = vmatpush.bf16.msk.msra.mxu3 %vm5068_vm13, %v3668_v51 }
 0x323   : > { %3175 = vmatmul.msk.bf16.vlgmr.msrb.gmra.mxu3 %vm1910_vm15, %v1909_v14  ;;  %v3556_v14 = vld [vmem:[%s5001_s7 + $0x28] sm:$0xff] }
 0x324   : > { %3206 = vmatpush.bf16.msk.msra.mxu3 %vm5069_vm5, %v3668_v51 }
 0x328   : > { %3208 = vmatpush.bf16.msk.msra.mxu3 %vm5070_vm9, %v3668_v51 }
 0x32c   : > { %3210 = vmatpush.bf16.msk.msra.mxu3 %vm5071_vm6, %v3668_v51 }
 0x330   : > { %3212 = vmatpush.bf16.msk.msra.mxu3 %vm4416_vm4, %v3668_v51  ;;  %v3535_v51 = vld [vmem:[%s4999_s5 + $0x48] sm:$0xff]  ;;  %vm2037_vm4 = vcmask 651264  }
 0x331   : > { %2101 = vmatpush.bf16.msrb.mxu2 %v3535_v51 }
 0x334   : > { %2266 = vmatpush.bf16.msrb.mxu3 %v3545_v49 }
 0x335   : > { %2102 = vmatpush.bf16.msrb.mxu2 %v3534_v22  ;;  %v3561_v22 = vld [vmem:[%s5003_s9 + $0x18] sm:$0xff] }
 0x338   : > { %2267 = vmatpush.bf16.msrb.mxu3 %v3544_v20 }
 0x339   : > { %2103 = vmatpush.bf16.msrb.mxu2 %v3533_v21 }
 0x33c   : > { %2268 = vmatpush.bf16.msrb.mxu3 %v3543_v28 }
 0x33d   : > { %2104 = vmatpush.bf16.msrb.mxu2 %v3532_v29  ;;  %v2337_v29 = vld [vmem:[%s5000_s6] sm:$0x1] }
 0x340   : > { %2269 = vmatpush.bf16.msrb.mxu3 %v3542_v31 }
 0x341   : > { %2105 = vmatpush.bf16.msrb.mxu2 %v3531_v32 }
 0x344   : > { %2270 = vmatpush.bf16.msrb.mxu3 %v3541_v37  ;;  %v2356_v37 = vld [vmem:[%s5002_s8] sm:$0x1] }
 0x386   : > { %v1930_v60 = vpop.f32.mrf.mxu3  ;;  %v1943_v3 = vpop.f32.mrf.mxu2 }
 0x38e   : > { %v1932_v7 = vpop.f32.mrf.mxu3  ;;  %v1945_v15 = vpop.f32.mrf.mxu2 }
 0x38f   : > { %v3553_v7 = vld [vmem:[%s5001_s7 + $0x10] sm:$0xff]  ;;  %v3552_v15 = vld [vmem:[%s5001_s7 + $0x8] sm:$0xff] }
 0x396   : > { %v1959_v17 = vpop.f32.mrf.mxu3 }
 0x397   : > { %v1976_v24 = vmax.f32 %v1930_v60, %v1959_v17  ;;  %v3555_v60 = vld [vmem:[%s5001_s7 + $0x20] sm:$0xff] }
 0x398   : > { %v3551_v17 = vld [vmem:[%s5001_s7] sm:$0xff] }
 0x399   : > { %v1978_v27 = vpack.c.bf16 %v1976_v24, %v1976_v24  ;;  %v2434_v24 = vld [vmem:[%s5003_s9 + $0x28] sm:$0x3] }
 0x39b   : > { %1992 = vmatmul.bf16.vlgmr.msrb.gmra.mxu1 %v1978_v27  ;;  %2018 = vmatmul.bf16.vlgmr.msra.gmra.mxu3 %v1978_v27 }
 0x39e   : > { %v1961_v44 = vpop.f32.mrf.mxu3 }
 0x39f   : > { %v2457_v44 = vunpack.c.l.b16 %v2434_v24 }
 0x3a6   : > { %v1972_v39 = vpop.f32.mrf.mxu3 }
 0x3a7   : > { %v1977_v33 = vmax.f32 %v1943_v3, %v1972_v39  ;;  %v3554_v3 = vld [vmem:[%s5001_s7 + $0x18] sm:$0xff] }
 0x3a9   : > { %v1979_v16 = vpack.c.bf16 %v1977_v33, %v1977_v33  ;;  %v2463_v33 = vpack.c.b16 %v2457_v44, %v2457_v44 }
 0x3ab   : > { %3196 = vmatmul.msk.bf16.vlgmr.msra.gmra.mxu2 %vm1980_vm12, %v1979_v16  ;;  %3217 = vmatmul.msk.bf16.vlgmr.msrb.gmra.mxu0 %vm1980_vm12, %v1979_v16  ;;  %v2473_v16 = vsel %vm1432_vm10, %v2463_v33, 0  ;;  %vm2402_vm10 = vcmask 982016  }
 0x3ac   : > { %2326 = vmatpush.bf16.msra.mxu2 %v3550_v38  ;;  %2409 = vmatpush.bf16.msrb.mxu0 %v2407_v18 }
 0x3ad   : > { %2477 = vmatpush.bf16.msrb.mxu1 %v2473_v16 }
 0x3ae   : > { %v1974_v48 = vpop.f32.mrf.mxu3 }
 0x3af   : > { %v3562_v48 = vld [vmem:[%s5003_s9 + $0x20] sm:$0xff] }
 0x3b0   : > { %2327 = vmatpush.bf16.msra.mxu2 %v3549_v41  ;;  %2410 = vmatpush.bf16.msrb.mxu0 %v3557_v47 }
 0x3b1   : > { %2478 = vmatpush.bf16.msrb.mxu1 %v3562_v48 }
 0x3b4   : > { %2328 = vmatpush.bf16.msra.mxu2 %v3548_v45  ;;  %2411 = vmatpush.bf16.msrb.mxu0 %v3556_v14 }
 0x3b5   : > { %2479 = vmatpush.bf16.msrb.mxu1 %v3561_v22 }
 0x3b8   : > { %2329 = vmatpush.bf16.msra.mxu2 %v3547_v46  ;;  %2412 = vmatpush.bf16.msrb.mxu0 %v3555_v60  ;;  %v2435_v46 = vld [vmem:[%s5004_s10] sm:$0x1] }
 0x3b9   : > { %2480 = vmatpush.bf16.msrb.mxu1 %v3560_v19 }
 0x3bc   : > { %2330 = vmatpush.bf16.msra.mxu2 %v3546_v54  ;;  %2413 = vmatpush.bf16.msrb.mxu0 %v3554_v3 }
 0x3bd   : > { %2481 = vmatpush.bf16.msrb.mxu1 %v3559_v34 }
 0x3c0   : > { %2414 = vmatpush.bf16.msrb.mxu0 %v3553_v7 }
 0x3c1   : > { %2482 = vmatpush.bf16.msrb.mxu1 %v3558_v36 }
 0x3c4   : > { %2415 = vmatpush.bf16.msrb.mxu0 %v3552_v15 }
 0x3c8   : > { %2416 = vmatpush.bf16.msrb.mxu0 %v3551_v17 }
 0x418   : > { %v1993_v50 = vpop.f32.mrf.mxu1 }
 0x41e   : > { %v2019_v40 = vpop.f32.mrf.mxu3 }
 0x420   : > { %v1995_v42 = vpop.f32.mrf.mxu1 }
 0x426   : > { %v2021_v52 = vpop.f32.mrf.mxu3 }
 0x428   : > { %v2032_v53 = vpop.f32.mrf.mxu0 }
 0x429   : > { %v2033_v56 = vadd.f32 %v2032_v53, %v2019_v40 }
 0x42e   : > { %v2006_v55 = vpop.f32.mrf.mxu2 }
 0x42f   : > { %v2007_v57 = vadd.f32 %v2006_v55, %v1993_v50 }
 0x430   : > { %v2034_v58 = vpop.f32.mrf.mxu0 }
 0x431   : > { %v2036_v59 = vmax.f32 %v2007_v57, %v2033_v56 }
 0x433   : > { %2038 = vst.msk [vmem:[#allocation3] sm:$0x1f] %vm2037_vm4, %v2036_v59 }
 0x436   : > { %v2008_v61 = vpop.f32.mrf.mxu2 }
 0x43a   : > { %v2051_v62 = vld [vmem:[#allocation3 + $0x1] sm:$0x1]  ;;  %v2039_v63 = vld [vmem:[#allocation3] sm:$0x1]  ;;  %v2157_v0 = vld [vmem:[#allocation3 + $0x2] sm:$0x1] }
 0x43b   : > { %v2052_v1 = vpack.c.bf16 %v2051_v62, %v2051_v62  ;;  %v2040_v2 = vpack.c.bf16 %v2039_v63, %v2039_v63  ;;  %v2158_v4 = vpack.c.bf16 %v2157_v0, %v2157_v0  ;;  %v2217_v6 = vld [vmem:[#allocation3 + $0x3] sm:$0x1]  ;;  %v2277_v9 = vld [vmem:[#allocation3 + $0x4] sm:$0x1] }
 0x43c   : > { %v2218_v8 = vpack.c.bf16 %v2217_v6, %v2217_v6  ;;  %v2278_v10 = vpack.c.bf16 %v2277_v9, %v2277_v9 }
 0x43d   : > { %3248 = vmatmul.msk.bf16.vlgmr.msrb.gmra.mxu2 %vm2094_vm3, %v2052_v1  ;;  %3269 = vmatmul.msk.bf16.vlgmr.msra.gmra.mxu0 %vm2094_vm3, %v2040_v2 }
 0x43e   : > { %3300 = vmatmul.msk.bf16.vlgmr.msra.gmra.mxu1 %vm2094_vm3, %v2158_v4  ;;  %3331 = vmatmul.msk.bf16.vlgmr.msrb.gmra.mxu3 %vm2094_vm3, %v2218_v8 }
 0x44d   : > { %3362 = vmatmul.msk.bf16.vlgmr.msra.gmra.mxu2 %vm2094_vm3, %v2278_v10 }
 0x4ba   : > { %v2153_v27 = vpop.f32.mrf.mxu0 }
 0x4bb   : > { %v2212_v39 = vpop.f32.mrf.mxu1 }
 0x4c0   : > { %v2107_v51 = vpop.f32.mrf.mxu2 }
 0x4c1   : > { %v2272_v5 = vpop.f32.mrf.mxu3  ;;  %v2154_v25 = vadd.f32 %v2153_v27, %v2107_v51 }
 0x4c2   : > { %v2155_v23 = vpop.f32.mrf.mxu0 }
 0x4c3   : > { %v2214_v49 = vpop.f32.mrf.mxu1  ;;  %v2216_v35 = vadd.f32 %v2212_v39, %v2154_v25 }
 0x4c5   : > { %v2276_v26 = vadd.f32 %v2272_v5, %v2216_v35 }
 0x4c8   : > { %v2109_v20 = vpop.f32.mrf.mxu2 }
 0x4c9   : > { %v2274_v21 = vpop.f32.mrf.mxu3 }
 0x4d0   : > { %v2332_v28 = vpop.f32.mrf.mxu2 }
 0x4d1   : > { %v2336_v43 = vadd.f32 %v2332_v28, %v2276_v26 }
 0x4d3   : > { %v2338_v30 = vadd.f32 %v2337_v29, %v2336_v43 }
 0x4d5   : > { %v2339_v31 = vmax.f32 %v2338_v30, 0.0 }
 0x4d7   : > { %v2340_v32 = vpack.c.bf16 %v2339_v31, %v2339_v31 }
 0x4d8   : > { %v2334_v50 = vpop.f32.mrf.mxu2 }
 0x4d9   : > { %3391 = vmatmul.msk.bf16.vlgmr.msrb.gmra.mxu0 %vm2402_vm10, %v2340_v32 }
 0x556   : > { %v2418_v38 = vpop.f32.mrf.mxu0 }
 0x557   : > { %v2419_v40 = vadd.f32 %v2418_v38, %v2356_v37 }
 0x559   : > { %v2422_v41 = vmax.f32 %v2419_v40, 0.0 }
 0x55b   : > { %v2423_v42 = vpack.c.bf16 %v2422_v41, %v2422_v41 }
 0x55d   : > { %3412 = vmatmul.msk.bf16.vlgmr.msrb.gmra.mxu1 %vm1341_vm14, %v2423_v42 }
 0x55e   : > { %v2420_v45 = vpop.f32.mrf.mxu0 }
 0x5da   : > { %v2484_v52 = vpop.f32.mrf.mxu1 }
 0x5db   : > { %v2485_v53 = vadd.f32 %v2484_v52, %v2435_v46 }
 0x5dd   : > { %2489 = vst.msk [vmem:[%s378_s30] sm:$0x1] %vm2488_vm8, %v2485_v53 }
 0x5de   : > { %3631 = shalt.err (!%p3628_p3)
}
 0x5df   : > { %3563 = dma.vmem_to_hbm [thread:$0]  (%p3768_p5), %s2502_s26, 16, %s2504_s12, %s2491_s13  }
 0x5e2   : > { %v2486_v54 = vpop.f32.mrf.mxu1 }
 0x5e3 PF: > { %p3569_p4 = scmp.ge.s32.totalorder %s3666_s20, 2  ;;  %s2515_s16 = sand.u32 1, %s3654_s17  }
 0x5e4   : > { %s2516_s29 = scalar_lea.sflag [#allocation5], %s2515_s16 }
 0x5e5   : > { %p3566_p7 = pnand %p3569_p4, %p3772_p6 }
 0x5e7   : > { %p3567_p8 = pneg %p3566_p7 }
 0x5e9   : > { %3649 = dma.done.wait (%p3567_p8), %s2516_s29, 16  }
 0x5ea   : > { %3651 = vsyncadd (%p3567_p8), %s2516_s29, 4294967280  ;;  %s5073_s30 = sld [smem:[#allocation7_spill]]  ;;  %p21_p9 = scmp.ge.s32.totalorder %s3755_s23, 4  }
 0x5eb   : > { %s5074_s17 = smov %s3658_s18  ;;  %s5075_s18 = smov %s3662_s19 }
 0x5ec   : > { %s5077_s20 = smov %s3755_s23  ;;  %23 = sbr.rel (!%p21_p9) target bundleno = 5 (0x5), region = 111 }
 0x5f0   : > { %s5076_s19 = smov %s5073_s30 }
 0x5f1   :  { %2521 = vsyncpa [#allocation5], 1 }
 0x5f2   :  { %2523 = vsyncpa [#allocation5 + $0x1], 1 }

</bundles_post_ra>
